<compile_context>
chip_gen: v7x
topology: tpu7x:2x2x1
jax: 0.10.0
libtpu: 0.0.40
codegen_flags: <defaults>
</compile_context>

<pallas_src>
import functools

import jax
import jax.numpy as jnp
from jax import lax
from jax.experimental import pallas as pl
from jax.experimental.pallas import tpu as pltpu

_MiB = 1024 * 1024


def _pick_tile(dim, candidates=(512, 256, 128, 64, 32, 16, 8)):
    """Largest candidate tile that evenly divides `dim` (fallback: full dim)."""
    for c in candidates:
        if dim % c == 0:
            return c
    return dim


def _vmem_limit(bytes_needed):
    # 2x headroom for compiler scratch / intermediates, floor 16 MiB, cap
    # 40 MiB so the scoped limit stays well inside v7x's 64 MiB physical VMEM
    # (v5e/v6e have 128 MiB, so the cap is safe everywhere).
    return int(min(max(2 * bytes_needed, 16 * _MiB), 40 * _MiB))


# ---------------------------------------------------------------------------
# Kernel 1: row-tiled linear projection  y = x @ W + b   (batch folded into M)
# ---------------------------------------------------------------------------
def _linear_kernel(x_ref, w_ref, b_ref, out_ref):
    x = x_ref[...].astype(jnp.bfloat16)                     # (tm, Din) bf16
    y = jnp.dot(x, w_ref[...],
                preferred_element_type=jnp.float32)          # f32 accumulation
    y = y + b_ref[...]                                       # (1, Dout) bias
    out_ref[...] = y.astype(out_ref.dtype)                   # bf16 store


def _linear(x2d, w, b):
    M, Din = x2d.shape
    Dout = w.shape[1]
    tm = _pick_tile(M)

    # Per-step residency: double-buffered f32 input tile, bf16 weight + f32
    # bias (grid-invariant), double-buffered bf16 output tile, f32 temp.
    step_bytes = (tm * Din * 4) * 2 + (Din * Dout * 2) * 2 + Dout * 4 * 2 \
                 + (tm * Dout * 2) * 2 + tm * Dout * 4

    return pl.pallas_call(
        _linear_kernel,
        out_shape=jax.ShapeDtypeStruct((M, Dout), jnp.bfloat16),
        grid=(M // tm,),
        in_specs=[
            pl.BlockSpec((tm, Din), lambda i: (i, 0)),
            # weights / bias are grid-invariant (same block every step)
            pl.BlockSpec((Din, Dout), lambda i: (0, 0)),
            pl.BlockSpec((1, Dout), lambda i: (0, 0)),
        ],
        out_specs=pl.BlockSpec((tm, Dout), lambda i: (i, 0)),
        compiler_params=pltpu.CompilerParams(
            dimension_semantics=("parallel",),
            vmem_limit_bytes=_vmem_limit(step_bytes)),
    )(x2d, w, b)


# ---------------------------------------------------------------------------
# Kernel 2: attention core for one (batch, q-tile): scores -> softmax -> @V
# ---------------------------------------------------------------------------
def _attention_kernel(q_ref, k_ref, v_ref, out_ref, attn_ref, *, inv_scale):
    q = q_ref[0]                                             # (tq,  D) bf16
    k = k_ref[0]                                             # (Skv, D) bf16
    v = v_ref[0]                                             # (Skv, D) bf16

    # scores = Q @ K^T : contract the last dims (no K transpose materialized)
    scores = lax.dot_general(
        q, k, dimension_numbers=(((1,), (1,)), ((), ())),
        preferred_element_type=jnp.float32)                  # (tq, Skv) f32
    scores = scores * inv_scale                              # VPU mul (in-kernel scale)

    # exact softmax in f32 (rows sum to 1 up to f32 rounding)
    m = jnp.max(scores, axis=-1, keepdims=True)
    e = jnp.exp(scores - m)
    denom = jnp.sum(e, axis=-1, keepdims=True)
    p = e / denom                                            # (tq, Skv) f32

    attn_ref[0] = p.astype(attn_ref.dtype)                   # bf16, lane-dense

    out_ref[0] = jnp.dot(p.astype(jnp.bfloat16), v,
                         preferred_element_type=jnp.float32)  # (tq, D) f32


def _attention(q, k, v, inv_scale):
    B, Sq, D = q.shape
    _, Skv, _ = k.shape
    tq = _pick_tile(Sq, (256, 128, 64, 32, 16, 8))

    kernel = functools.partial(_attention_kernel, inv_scale=inv_scale)

    # Per-step residency: double-buffered bf16 q/k/v tiles, f32 out tile,
    # bf16 attn tile, plus f32 scores/exp intermediates.
    step_bytes = ((tq * D * 2) + 2 * (Skv * D * 2)
                  + (tq * D * 4) + (tq * Skv * 2)) * 2 + 2 * tq * Skv * 4

    out, attn = pl.pallas_call(
        kernel,
        out_shape=(jax.ShapeDtypeStruct((B, Sq, D), jnp.float32),
                   jax.ShapeDtypeStruct((B, Sq, Skv), jnp.bfloat16)),
        grid=(B, Sq // tq),
        in_specs=[
            pl.BlockSpec((1, tq, D), lambda b, i: (b, i, 0)),
            pl.BlockSpec((1, Skv, D), lambda b, i: (b, 0, 0)),
            pl.BlockSpec((1, Skv, D), lambda b, i: (b, 0, 0)),
        ],
        out_specs=(pl.BlockSpec((1, tq, D), lambda b, i: (b, i, 0)),
                   pl.BlockSpec((1, tq, Skv), lambda b, i: (b, i, 0))),
        compiler_params=pltpu.CompilerParams(
            dimension_semantics=("parallel", "parallel"),   # both TCs busy on v7x
            vmem_limit_bytes=_vmem_limit(step_bytes)),
    )(q, k, v)
    return out, attn


# ---------------------------------------------------------------------------
# Forward pass
# ---------------------------------------------------------------------------
def cross_attention(query, key, value, params):
    """params: bf16 weights (D, D) as (in, out), f32 biases (1, D) -- see
    prepare_params (one-time, hoisted out of the forward path)."""
    B, Sq, D = query.shape
    _, Skv, _ = key.shape

    # Projections with the batch folded into the matmul M dimension
    # (zero-copy reshapes); outputs are bf16 so attention DMA bytes are halved.
    q = _linear(query.reshape(B * Sq, D), params["wq"], params["bq"]).reshape(B, Sq, D)
    k = _linear(key.reshape(B * Skv, D), params["wk"], params["bk"]).reshape(B, Skv, D)
    v = _linear(value.reshape(B * Skv, D), params["wv"], params["bv"]).reshape(B, Skv, D)

    inv_scale = float(1.0 / (D ** 0.5))
    return _attention(q, k, v, inv_scale)


# ---------------------------------------------------------------------------
# Parameters (Linear weights stored as (in, out))
# ---------------------------------------------------------------------------
def init_params(key, embed_dim):
    ks = jax.random.split(key, 6)

    def normal(k, shape, scale=0.02):
        return scale * jax.random.normal(k, shape, dtype=jnp.float32)

    return {
        "wq": normal(ks[0], (embed_dim, embed_dim)),
        "bq": normal(ks[1], (1, embed_dim), 0.01),
        "wk": normal(ks[2], (embed_dim, embed_dim)),
        "bk": normal(ks[3], (1, embed_dim), 0.01),
        "wv": normal(ks[4], (embed_dim, embed_dim)),
        "bv": normal(ks[5], (1, embed_dim), 0.01),
    }


def prepare_params(params):
    """One-time (init-time) dtype prep, hoisted out of the forward path:
    weights -> bf16 (halves weight DMA bytes), biases -> f32."""
    out = {}
    for name, val in params.items():
        if name.startswith("w"):
            out[name] = val.astype(jnp.bfloat16)
        else:
            out[name] = val.astype(jnp.float32)
    return out


# ---------------------------------------------------------------------------
# Pure-JAX f32 reference (correctness check)
# ---------------------------------------------------------------------------
def cross_attention_ref(query, key, value, params):
    D = query.shape[-1]
    q = jnp.einsum("bsd,de->bse", query, params["wq"]) + params["bq"]
    k = jnp.einsum("bsd,de->bse", key, params["wk"]) + params["bk"]
    v = jnp.einsum("bsd,de->bse", value, params["wv"]) + params["bv"]
    scores = jnp.einsum("bqd,bkd->bqk", q, k) / jnp.float32(float(D) ** 0.5)
    p = jax.nn.softmax(scores, axis=-1)
    return jnp.einsum("bqk,bkd->bqd", p, v), p


if __name__ == "__main__":
    EMBED_DIM = 128           # lane width (multiple of 128)
    B, SQ, SKV = 2, 128, 128  # Skv multiple of 128 -> lane-dense attn writeback

    root = jax.random.PRNGKey(0)
    k_q, k_k, k_v, k_w = jax.random.split(root, 4)
    query = jax.random.normal(k_q, (B, SQ, EMBED_DIM), dtype=jnp.float32)
    key = jax.random.normal(k_k, (B, SKV, EMBED_DIM), dtype=jnp.float32)
    value = jax.random.normal(k_v, (B, SKV, EMBED_DIM), dtype=jnp.float32)

    params_f32 = init_params(k_w, EMBED_DIM)
    params = prepare_params(params_f32)     # once, outside the forward path

    fwd = jax.jit(cross_attention)
    out, attn = fwd(query, key, value, params)
    out = jax.block_until_ready(out)
    attn = jax.block_until_ready(attn)

    assert out.shape == (B, SQ, EMBED_DIM)
    assert attn.shape == (B, SQ, SKV)
    assert bool(jnp.all(jnp.isfinite(out)))
    assert bool(jnp.all(jnp.isfinite(attn.astype(jnp.float32))))

    # attention rows sum to ~1 (exact softmax; bf16 output storage only)
    row_sums = jnp.sum(attn.astype(jnp.float32), axis=-1)
    assert bool(jnp.all(jnp.abs(row_sums - 1.0) < 2e-2))

    # compare against pure-JAX f32 reference (bf16 matmuls / bf16 attn storage
    # introduce small drift -> generous tolerance)
    ref_out, ref_attn = cross_attention_ref(query, key, value, params_f32)
    assert bool(jnp.all(jnp.abs(out - ref_out) < 5e-2))
    assert bool(jnp.all(jnp.abs(attn.astype(jnp.float32) - ref_attn) < 5e-2))

    print("KERNEL_OK")
</pallas_src>

<mosaic_0001>
module attributes {stable_mosaic.version = 11 : i64} {
  func.func @_linear_kernel(%arg0: i32, %arg1: memref<256x128xf32, #tpu.memory_space<vmem>>, %arg2: memref<128x128xbf16, #tpu.memory_space<vmem>>, %arg3: memref<1x128xf32, #tpu.memory_space<vmem>>, %arg4: memref<256x128xbf16, #tpu.memory_space<vmem>>) attributes {dimension_semantics = [#tpu.dimension_semantics<parallel>], iteration_bounds = array<i64: 1>, scalar_prefetch = 0 : i64, scratch_operands = 0 : i64, tpu.core_type = #tpu.core_type<tc>, window_params = [{transform_indices = @transform_0, window_bounds = array<i64: 256, 128>}, {pipeline_mode = #tpu.pipeline_mode<synchronous>, transform_indices = @transform_1, window_bounds = array<i64: 128, 128>}, {pipeline_mode = #tpu.pipeline_mode<synchronous>, transform_indices = @transform_2, window_bounds = array<i64: 1, 128>}, {transform_indices = @transform_3, window_bounds = array<i64: 256, 128>}]} {
    %c0 = arith.constant 0 : index
    %c0_0 = arith.constant 0 : index
    %0 = vector.load %arg1[%c0, %c0_0] : memref<256x128xf32, #tpu.memory_space<vmem>>, vector<256x128xf32>
    %1 = arith.truncf %0 : vector<256x128xf32> to vector<256x128xbf16>
    %c0_1 = arith.constant 0 : index
    %c0_2 = arith.constant 0 : index
    %2 = vector.load %arg2[%c0_1, %c0_2] : memref<128x128xbf16, #tpu.memory_space<vmem>>, vector<128x128xbf16>
    %cst = arith.constant dense<0.000000e+00> : vector<256x128xf32>
    %3 = tpu.matmul %1, %2, %cst {dimension_numbers = #tpu.dot_dimension_numbers<[1], [0], [0], [1], [0, 0, 1, 1], [], []>} : vector<256x128xbf16>, vector<128x128xbf16>, vector<256x128xf32> -> vector<256x128xf32>
    %c0_3 = arith.constant 0 : index
    %c0_4 = arith.constant 0 : index
    %4 = vector.load %arg3[%c0_3, %c0_4] : memref<1x128xf32, #tpu.memory_space<vmem>>, vector<1x128xf32>
    %5 = vector.broadcast %4 : vector<1x128xf32> to vector<256x128xf32>
    %6 = arith.addf %3, %5 : vector<256x128xf32>
    %7 = arith.truncf %6 : vector<256x128xf32> to vector<256x128xbf16>
    %c0_5 = arith.constant 0 : index
    %c0_6 = arith.constant 0 : index
    %8 = vector.load %arg4[%c0_5, %c0_6] : memref<256x128xbf16, #tpu.memory_space<vmem>>, vector<256x128xbf16>
    tpu.vector_store %arg4[%c0_5, %c0_6], %7 {strides = array<i32>} : memref<256x128xbf16, #tpu.memory_space<vmem>>, vector<256x128xbf16>,
    return
  }
  func.func @transform_0(%arg0: i32) -> (i32, i32) {
    %c0_i32 = arith.constant 0 : i32
    %c0_i32_0 = arith.constant 0 : i32
    return %arg0, %c0_i32 : i32, i32
  }
  func.func @transform_1(%arg0: i32) -> (i32, i32) {
    %c0_i32 = arith.constant 0 : i32
    %c0_i32_0 = arith.constant 0 : i32
    %c0_i32_1 = arith.constant 0 : i32
    return %c0_i32, %c0_i32_0 : i32, i32
  }
  func.func @transform_2(%arg0: i32) -> (i32, i32) {
    %c0_i32 = arith.constant 0 : i32
    %c0_i32_0 = arith.constant 0 : i32
    %c0_i32_1 = arith.constant 0 : i32
    return %c0_i32, %c0_i32_0 : i32, i32
  }
  func.func @transform_3(%arg0: i32) -> (i32, i32) {
    %c0_i32 = arith.constant 0 : i32
    %c0_i32_0 = arith.constant 0 : i32
    return %arg0, %c0_i32 : i32, i32
  }
}

module attributes {stable_mosaic.version = 11 : i64} {
  func.func @_attention_kernel(%arg0: i32, %arg1: i32, %arg2: memref<1x128x128xbf16, #tpu.memory_space<vmem>>, %arg3: memref<1x128x128xbf16, #tpu.memory_space<vmem>>, %arg4: memref<1x128x128xbf16, #tpu.memory_space<vmem>>, %arg5: memref<1x128x128xf32, #tpu.memory_space<vmem>>, %arg6: memref<1x128x128xbf16, #tpu.memory_space<vmem>>) attributes {dimension_semantics = [#tpu.dimension_semantics<parallel>, #tpu.dimension_semantics<parallel>], iteration_bounds = array<i64: 2, 1>, scalar_prefetch = 0 : i64, scratch_operands = 0 : i64, tpu.core_type = #tpu.core_type<tc>, window_params = [{transform_indices = @transform_0, window_bounds = array<i64: 1, 128, 128>}, {transform_indices = @transform_1, window_bounds = array<i64: 1, 128, 128>}, {transform_indices = @transform_2, window_bounds = array<i64: 1, 128, 128>}, {transform_indices = @transform_3, window_bounds = array<i64: 1, 128, 128>}, {transform_indices = @transform_4, window_bounds = array<i64: 1, 128, 128>}]} {
    %c0 = arith.constant 0 : index
    %c0_0 = arith.constant 0 : index
    %c0_1 = arith.constant 0 : index
    %0 = vector.load %arg2[%c0, %c0_0, %c0_1] : memref<1x128x128xbf16, #tpu.memory_space<vmem>>, vector<1x128x128xbf16>
    %1 = vector.shape_cast %0 : vector<1x128x128xbf16> to vector<128x128xbf16>
    %c0_2 = arith.constant 0 : index
    %c0_3 = arith.constant 0 : index
    %c0_4 = arith.constant 0 : index
    %2 = vector.load %arg3[%c0_2, %c0_3, %c0_4] : memref<1x128x128xbf16, #tpu.memory_space<vmem>>, vector<1x128x128xbf16>
    %3 = vector.shape_cast %2 : vector<1x128x128xbf16> to vector<128x128xbf16>
    %c0_5 = arith.constant 0 : index
    %c0_6 = arith.constant 0 : index
    %c0_7 = arith.constant 0 : index
    %4 = vector.load %arg4[%c0_5, %c0_6, %c0_7] : memref<1x128x128xbf16, #tpu.memory_space<vmem>>, vector<1x128x128xbf16>
    %5 = vector.shape_cast %4 : vector<1x128x128xbf16> to vector<128x128xbf16>
    %cst = arith.constant dense<0.000000e+00> : vector<128x128xf32>
    %6 = tpu.matmul %1, %3, %cst {dimension_numbers = #tpu.dot_dimension_numbers<[1], [1], [0], [0], [0, 0, 1, 0], [], []>} : vector<128x128xbf16>, vector<128x128xbf16>, vector<128x128xf32> -> vector<128x128xf32>
    %cst_8 = arith.constant 0.0883883461 : f32
    %7 = vector.broadcast %cst_8 : f32 to vector<128x128xf32>
    %8 = arith.mulf %6, %7 : vector<128x128xf32>
    %cst_9 = arith.constant dense<0xFF800000> : vector<128xf32>
    %9 = vector.multi_reduction <maximumf>, %8, %cst_9 [1] : vector<128x128xf32> to vector<128xf32>
    %10 = vector.shape_cast %9 : vector<128xf32> to vector<128x1xf32>
    %11 = vector.broadcast %10 : vector<128x1xf32> to vector<128x128xf32>
    %12 = arith.subf %8, %11 : vector<128x128xf32>
    %13 = math.exp %12 : vector<128x128xf32>
    %cst_10 = arith.constant dense<0.000000e+00> : vector<128xf32>
    %14 = vector.multi_reduction <add>, %13, %cst_10 [1] : vector<128x128xf32> to vector<128xf32>
    %15 = vector.shape_cast %14 : vector<128xf32> to vector<128x1xf32>
    %16 = vector.broadcast %15 : vector<128x1xf32> to vector<128x128xf32>
    %17 = arith.divf %13, %16 : vector<128x128xf32>
    %18 = arith.truncf %17 : vector<128x128xf32> to vector<128x128xbf16>
    %c0_11 = arith.constant 0 : index
    %c0_12 = arith.constant 0 : index
    %c0_13 = arith.constant 0 : index
    %19 = vector.load %arg6[%c0_11, %c0_12, %c0_13] : memref<1x128x128xbf16, #tpu.memory_space<vmem>>, vector<1x128x128xbf16>
    %20 = vector.shape_cast %19 : vector<1x128x128xbf16> to vector<128x128xbf16>
    %21 = vector.shape_cast %18 : vector<128x128xbf16> to vector<1x128x128xbf16>
    tpu.vector_store %arg6[%c0_11, %c0_12, %c0_13], %21 {strides = array<i32>} : memref<1x128x128xbf16, #tpu.memory_space<vmem>>, vector<1x128x128xbf16>,
    %22 = arith.truncf %17 : vector<128x128xf32> to vector<128x128xbf16>
    %cst_14 = arith.constant dense<0.000000e+00> : vector<128x128xf32>
    %23 = tpu.matmul %22, %5, %cst_14 {dimension_numbers = #tpu.dot_dimension_numbers<[1], [0], [0], [1], [0, 0, 1, 1], [], []>} : vector<128x128xbf16>, vector<128x128xbf16>, vector<128x128xf32> -> vector<128x128xf32>
    %c0_15 = arith.constant 0 : index
    %c0_16 = arith.constant 0 : index
    %c0_17 = arith.constant 0 : index
    %24 = vector.load %arg5[%c0_15, %c0_16, %c0_17] : memref<1x128x128xf32, #tpu.memory_space<vmem>>, vector<1x128x128xf32>
    %25 = vector.shape_cast %24 : vector<1x128x128xf32> to vector<128x128xf32>
    %26 = vector.shape_cast %23 : vector<128x128xf32> to vector<1x128x128xf32>
    tpu.vector_store %arg5[%c0_15, %c0_16, %c0_17], %26 {strides = array<i32>} : memref<1x128x128xf32, #tpu.memory_space<vmem>>, vector<1x128x128xf32>,
    return
  }
  func.func @transform_0(%arg0: i32, %arg1: i32) -> (i32, i32, i32) {
    %c0_i32 = arith.constant 0 : i32
    %c0_i32_0 = arith.constant 0 : i32
    return %arg0, %arg1, %c0_i32 : i32, i32, i32
  }
  func.func @transform_1(%arg0: i32, %arg1: i32) -> (i32, i32, i32) {
    %c0_i32 = arith.constant 0 : i32
    %c0_i32_0 = arith.constant 0 : i32
    %c0_i32_1 = arith.constant 0 : i32
    return %arg0, %c0_i32, %c0_i32_0 : i32, i32, i32
  }
  func.func @transform_2(%arg0: i32, %arg1: i32) -> (i32, i32, i32) {
    %c0_i32 = arith.constant 0 : i32
    %c0_i32_0 = arith.constant 0 : i32
    %c0_i32_1 = arith.constant 0 : i32
    return %arg0, %c0_i32, %c0_i32_0 : i32, i32, i32
  }
  func.func @transform_3(%arg0: i32, %arg1: i32) -> (i32, i32, i32) {
    %c0_i32 = arith.constant 0 : i32
    %c0_i32_0 = arith.constant 0 : i32
    return %arg0, %arg1, %c0_i32 : i32, i32, i32
  }
  func.func @transform_4(%arg0: i32, %arg1: i32) -> (i32, i32, i32) {
    %c0_i32 = arith.constant 0 : i32
    %c0_i32_0 = arith.constant 0 : i32
    return %arg0, %arg1, %c0_i32 : i32, i32, i32
  }
}

module attributes {stable_mosaic.version = 11 : i64} {
  func.func @_linear_kernel(%arg0: i32, %arg1: memref<256x128xf32, #tpu.memory_space<vmem>>, %arg2: memref<128x128xbf16, #tpu.memory_space<vmem>>, %arg3: memref<1x128xf32, #tpu.memory_space<vmem>>, %arg4: memref<256x128xbf16, #tpu.memory_space<vmem>>) attributes {dimension_semantics = [#tpu.dimension_semantics<parallel>], iteration_bounds = array<i64: 1>, scalar_prefetch = 0 : i64, scratch_operands = 0 : i64, tpu.core_type = #tpu.core_type<tc>, window_params = [{transform_indices = @transform_0, window_bounds = array<i64: 256, 128>}, {pipeline_mode = #tpu.pipeline_mode<synchronous>, transform_indices = @transform_1, window_bounds = array<i64: 128, 128>}, {pipeline_mode = #tpu.pipeline_mode<synchronous>, transform_indices = @transform_2, window_bounds = array<i64: 1, 128>}, {transform_indices = @transform_3, window_bounds = array<i64: 256, 128>}]} {
    %c0 = arith.constant 0 : index
    %c0_0 = arith.constant 0 : index
    %0 = vector.load %arg1[%c0, %c0_0] : memref<256x128xf32, #tpu.memory_space<vmem>>, vector<256x128xf32>
    %1 = arith.truncf %0 : vector<256x128xf32> to vector<256x128xbf16>
    %c0_1 = arith.constant 0 : index
    %c0_2 = arith.constant 0 : index
    %2 = vector.load %arg2[%c0_1, %c0_2] : memref<128x128xbf16, #tpu.memory_space<vmem>>, vector<128x128xbf16>
    %cst = arith.constant dense<0.000000e+00> : vector<256x128xf32>
    %3 = tpu.matmul %1, %2, %cst {dimension_numbers = #tpu.dot_dimension_numbers<[1], [0], [0], [1], [0, 0, 1, 1], [], []>} : vector<256x128xbf16>, vector<128x128xbf16>, vector<256x128xf32> -> vector<256x128xf32>
    %c0_3 = arith.constant 0 : index
    %c0_4 = arith.constant 0 : index
    %4 = vector.load %arg3[%c0_3, %c0_4] : memref<1x128xf32, #tpu.memory_space<vmem>>, vector<1x128xf32>
    %5 = vector.broadcast %4 : vector<1x128xf32> to vector<256x128xf32>
    %6 = arith.addf %3, %5 : vector<256x128xf32>
    %7 = arith.truncf %6 : vector<256x128xf32> to vector<256x128xbf16>
    %c0_5 = arith.constant 0 : index
    %c0_6 = arith.constant 0 : index
    %8 = vector.load %arg4[%c0_5, %c0_6] : memref<256x128xbf16, #tpu.memory_space<vmem>>, vector<256x128xbf16>
    tpu.vector_store %arg4[%c0_5, %c0_6], %7 {strides = array<i32>} : memref<256x128xbf16, #tpu.memory_space<vmem>>, vector<256x128xbf16>,
    return
  }
  func.func @transform_0(%arg0: i32) -> (i32, i32) {
    %c0_i32 = arith.constant 0 : i32
    %c0_i32_0 = arith.constant 0 : i32
    return %arg0, %c0_i32 : i32, i32
  }
  func.func @transform_1(%arg0: i32) -> (i32, i32) {
    %c0_i32 = arith.constant 0 : i32
    %c0_i32_0 = arith.constant 0 : i32
    %c0_i32_1 = arith.constant 0 : i32
    return %c0_i32, %c0_i32_0 : i32, i32
  }
  func.func @transform_2(%arg0: i32) -> (i32, i32) {
    %c0_i32 = arith.constant 0 : i32
    %c0_i32_0 = arith.constant 0 : i32
    %c0_i32_1 = arith.constant 0 : i32
    return %c0_i32, %c0_i32_0 : i32, i32
  }
  func.func @transform_3(%arg0: i32) -> (i32, i32) {
    %c0_i32 = arith.constant 0 : i32
    %c0_i32_0 = arith.constant 0 : i32
    return %arg0, %c0_i32 : i32, i32
  }
}

</mosaic_0001>

<bundles_post_ra>
// kernel: cross_attention.4
= control target key start
LH: loop header
LB: loop body
LE: loop exit
PB: predicated region body
PF: predicated region fallthrough
CT: control target
= control target key end

     0   :  { %8 = vsyncpa [#allocation3], 0  ;;  %s942_s0 = inlined_call_operand.hbm [shape: f32[256,128], index: 0, kind: input, shape index: {}]   ;;  %s943_s1 = inlined_call_operand.hbm [shape: bf16[128,128], index: 1, kind: input, shape index: {}]   ;;  %s944_s2 = inlined_call_operand.vmem [shape: f32[1,128], index: 2, kind: input, shape index: {}]   ;;  %s945_s3 = inlined_call_operand.vmem [shape: bf16[256,128], index: 3, kind: output, shape index: {}]  }
   0x1   :  { %9 = vsyncpa [#allocation5], 0  ;;  %s807_s12 = smov [#allocation2]   ;;  %s759_s16 = scalar_lea.hbm %s942_s0, 4096 }
   0x2   :  { %s15_s13 = sshll.u32 %s807_s12, 4  ;;  %p760_p0 = scmp.ne.s32.totalorder %s942_s0, %s759_s16  ;;  %s16_s13 = int_to_ptr.vmem [resolvable:$true] %s15_s13 }
   0x3   :  { %p763_p1 = scmp.lt.u32.totalorder %s759_s16, %s942_s0 }
   0x5   :  { %p765_p2 = pnand %p763_p1, %p760_p0 }
   0x7   :  { %768 = shalt.err (!%p765_p2)
}
   0x8   :  { %s769_s21 = scalar_lea.vmem %s16_s13, 4096  ;;  %p774_p4 = scmp.lt.s32.totalorder %s16_s13, %s16_s13 }
   0x9   :  { %p770_p3 = scmp.ne.s32.totalorder %s16_s13, %s769_s21  ;;  %p775_p5 = scmp.lt.s32.totalorder %s769_s21, %s769_s21 }
   0xb   :  { %p776_p6 = por %p775_p5, %p774_p4 }
   0xd   :  { %p777_p7 = pnand %p776_p6, %p770_p3 }
   0xf   :  { %780 = shalt.err (!%p777_p7)
}
  0x10   :  { %s808_s22 = smov 128   ;;  %s809_s23 = smov 8  }
  0x11   :  { %21 = dma.hbm_to_vmem [thread:$0]  %s942_s0, 4096, %s16_s13, [#allocation3], %s808_s22, %s808_s22, %s809_s23  }
  0x12   :  { %s810_s26 = smov [#allocation4]   ;;  %s781_s30 = scalar_lea.hbm %s943_s1, 1024 }
  0x13   :  { %s27_s27 = sshll.u32 %s810_s26, 4  ;;  %p782_p8 = scmp.ne.s32.totalorder %s943_s1, %s781_s30  ;;  %s28_s27 = int_to_ptr.vmem [resolvable:$true] %s27_s27 }
  0x14   :  { %p785_p9 = scmp.lt.u32.totalorder %s781_s30, %s943_s1 }
  0x16   :  { %p787_p10 = pnand %p785_p9, %p782_p8 }
  0x18   :  { %790 = shalt.err (!%p787_p10)
}
  0x19   :  { %s791_s8 = scalar_lea.vmem %s28_s27, 1024  ;;  %p796_p12 = scmp.lt.s32.totalorder %s28_s27, %s28_s27 }
  0x1a   :  { %p792_p11 = scmp.ne.s32.totalorder %s28_s27, %s791_s8  ;;  %p797_p13 = scmp.lt.s32.totalorder %s791_s8, %s791_s8 }
  0x1c   :  { %p798_p0 = por %p797_p13, %p796_p12 }
  0x1e   :  { %p799_p1 = pnand %p798_p0, %p792_p11 }
  0x20   :  { %802 = shalt.err (!%p799_p1)
}
  0x21   :  { %s811_s0 = smov 64   ;;  %s812_s9 = smov 4  }
  0x22   :  { %33 = dma.hbm_to_vmem [thread:$0]  %s943_s1, 1024, %s28_s27, [#allocation5], %s811_s0, %s811_s0, %s812_s9  }
  0x23   :  { %803 = dma.done.wait [#allocation3], 4096  }
  0x24   :  { %804 = vsyncadd [#allocation3], 4294963200 }
  0x25   :  { %805 = dma.done.wait [#allocation5], 1024  }
  0x26   :  { %806 = vsyncadd [#allocation5], 4294966272  ;;  %v751_v0 = vld [vmem:[#allocation4] sm:$0xff]   ;;  %v752_v1 = vld [vmem:[#allocation4 + $0x8] sm:$0xff]  }
  0x27   :  { %681 = vmatprep.subr.bf16.mxu0 %v751_v0  ;;  %729 = vmatprep.subr.bf16.mxu1 %v751_v0  ;;  %v753_v2 = vld [vmem:[#allocation4 + $0x10] sm:$0xff]   ;;  %v754_v3 = vld [vmem:[#allocation4 + $0x18] sm:$0xff]   ;;  %v43_v4 = vld [vmem:[#allocation2] sm:$0xff] }
  0x28   :  { %682 = vmatpush3.bf16.msra.mxu0 %v751_v0  ;;  %737 = vmatpush3.bf16.msra.mxu1 %v751_v0  ;;  %v44_v5 = vld [vmem:[#allocation2 + $0x8] sm:$0xff]  ;;  %v59_v6 = vld [vmem:[#allocation2 + $0x80] sm:$0xff]  ;;  %v757_v12 = vld [vmem:[#allocation4 + $0x30] sm:$0xff]  }
  0x29   :  { %683 = vmatprep.subr.bf16.mxu0 %v752_v1  ;;  %730 = vmatprep.subr.bf16.mxu1 %v752_v1  ;;  %v75_v7 = vpack.c.bf16 %v44_v5, %v43_v4  ;;  %v60_v8 = vld [vmem:[#allocation2 + $0x88] sm:$0xff]  ;;  %v755_v10 = vld [vmem:[#allocation4 + $0x20] sm:$0xff]   ;;  %v758_v13 = vld [vmem:[#allocation4 + $0x38] sm:$0xff]  }
  0x2a   :  { %v83_v9 = vpack.c.bf16 %v60_v8, %v59_v6  ;;  %v756_v11 = vld [vmem:[#allocation4 + $0x28] sm:$0xff]   ;;  %v45_v14 = vld [vmem:[#allocation2 + $0x10] sm:$0xff]  ;;  %v46_v15 = vld [vmem:[#allocation2 + $0x18] sm:$0xff] }
  0x2b   :  { %697 = vmatprep.mubr.bf16.mxu0 %v75_v7  ;;  %v61_v16 = vld [vmem:[#allocation2 + $0x90] sm:$0xff]  ;;  %v62_v17 = vld [vmem:[#allocation2 + $0x98] sm:$0xff]  ;;  %v47_v18 = vld [vmem:[#allocation2 + $0x20] sm:$0xff]  ;;  %v76_v22 = vpack.c.bf16 %v46_v15, %v45_v14 }
  0x2c   :  { %684 = vmatpush3.bf16.msra.mxu0 %v752_v1  ;;  %738 = vmatpush3.bf16.msra.mxu1 %v752_v1  ;;  %v48_v19 = vld [vmem:[#allocation2 + $0x28] sm:$0xff]  ;;  %v63_v20 = vld [vmem:[#allocation2 + $0xa0] sm:$0xff]  ;;  %v84_v23 = vpack.c.bf16 %v62_v17, %v61_v16  ;;  %v49_v26 = vld [vmem:[#allocation2 + $0x30] sm:$0xff] }
  0x2d   :  { %685 = vmatprep.subr.bf16.mxu0 %v753_v2  ;;  %731 = vmatprep.subr.bf16.mxu1 %v753_v2  ;;  %v64_v21 = vld [vmem:[#allocation2 + $0xa8] sm:$0xff]  ;;  %v77_v24 = vpack.c.bf16 %v48_v19, %v47_v18  ;;  %v50_v27 = vld [vmem:[#allocation2 + $0x38] sm:$0xff]  ;;  %v65_v28 = vld [vmem:[#allocation2 + $0xb0] sm:$0xff] }
  0x2e   :  { %713 = vmatprep.mubr.bf16.mxu1 %v83_v9  ;;  %v85_v25 = vpack.c.bf16 %v64_v21, %v63_v20  ;;  %v66_v29 = vld [vmem:[#allocation2 + $0xb8] sm:$0xff]  ;;  %v51_v30 = vld [vmem:[#allocation2 + $0x40] sm:$0xff]  ;;  %v52_v31 = vld [vmem:[#allocation2 + $0x48] sm:$0xff]  ;;  %v78_v34 = vpack.c.bf16 %v50_v27, %v49_v26 }
  0x2f   :  { %v67_v32 = vld [vmem:[#allocation2 + $0xc0] sm:$0xff]  ;;  %v68_v33 = vld [vmem:[#allocation2 + $0xc8] sm:$0xff]  ;;  %v86_v35 = vpack.c.bf16 %v66_v29, %v65_v28  ;;  %v79_v36 = vpack.c.bf16 %v52_v31, %v51_v30  ;;  %v53_v38 = vld [vmem:[#allocation2 + $0x50] sm:$0xff] }
  0x30   :  { %686 = vmatpush3.bf16.msra.mxu0 %v753_v2  ;;  %739 = vmatpush3.bf16.msra.mxu1 %v753_v2  ;;  %v87_v37 = vpack.c.bf16 %v68_v33, %v67_v32  ;;  %v54_v39 = vld [vmem:[#allocation2 + $0x58] sm:$0xff]  ;;  %v69_v40 = vld [vmem:[#allocation2 + $0xd0] sm:$0xff]  ;;  %v55_v42 = vld [vmem:[#allocation2 + $0x60] sm:$0xff] }
  0x31   :  { %687 = vmatprep.subr.bf16.mxu0 %v754_v3  ;;  %732 = vmatprep.subr.bf16.mxu1 %v754_v3  ;;  %v70_v41 = vld [vmem:[#allocation2 + $0xd8] sm:$0xff]  ;;  %v56_v43 = vld [vmem:[#allocation2 + $0x68] sm:$0xff]  ;;  %v71_v44 = vld [vmem:[#allocation2 + $0xe0] sm:$0xff]  ;;  %v80_v46 = vpack.c.bf16 %v54_v39, %v53_v38 }
  0x32   :  { %v72_v45 = vld [vmem:[#allocation2 + $0xe8] sm:$0xff]  ;;  %v88_v47 = vpack.c.bf16 %v70_v41, %v69_v40  ;;  %v81_v48 = vpack.c.bf16 %v56_v43, %v55_v42  ;;  %v57_v50 = vld [vmem:[#allocation2 + $0x70] sm:$0xff]  ;;  %v58_v51 = vld [vmem:[#allocation2 + $0x78] sm:$0xff] }
  0x33   :  { %v89_v49 = vpack.c.bf16 %v72_v45, %v71_v44  ;;  %v73_v52 = vld [vmem:[#allocation2 + $0xf0] sm:$0xff]  ;;  %v74_v53 = vld [vmem:[#allocation2 + $0xf8] sm:$0xff]  ;;  %v82_v54 = vpack.c.bf16 %v58_v51, %v57_v50  ;;  %v860_v57 = vld [vmem:[%s944_s2] ss:$0 sm:$0xff] }
  0x34   :  { %688 = vmatpush3.bf16.msra.mxu0 %v754_v3  ;;  %740 = vmatpush3.bf16.msra.mxu1 %v754_v3  ;;  %v90_v55 = vpack.c.bf16 %v74_v53, %v73_v52 }
  0x35   :  { %689 = vmatprep.subr.bf16.mxu0 %v755_v10  ;;  %733 = vmatprep.subr.bf16.mxu1 %v755_v10 }
  0x38   :  { %690 = vmatpush3.bf16.msra.mxu0 %v755_v10  ;;  %741 = vmatpush3.bf16.msra.mxu1 %v755_v10 }
  0x39   :  { %691 = vmatprep.subr.bf16.mxu0 %v756_v11  ;;  %734 = vmatprep.subr.bf16.mxu1 %v756_v11 }
  0x3c   :  { %692 = vmatpush3.bf16.msra.mxu0 %v756_v11  ;;  %742 = vmatpush3.bf16.msra.mxu1 %v756_v11 }
  0x3d   :  { %693 = vmatprep.subr.bf16.mxu0 %v757_v12  ;;  %735 = vmatprep.subr.bf16.mxu1 %v757_v12 }
  0x40   :  { %694 = vmatpush3.bf16.msra.mxu0 %v757_v12  ;;  %743 = vmatpush3.bf16.msra.mxu1 %v757_v12 }
  0x41   :  { %695 = vmatprep.subr.bf16.mxu0 %v758_v13  ;;  %736 = vmatprep.subr.bf16.mxu1 %v758_v13 }
  0x44   :  { %696 = vmatpush3.bf16.msra.mxu0 %v758_v13  ;;  %744 = vmatpush3.bf16.msra.mxu1 %v758_v13 }
  0x47   :  { %698 = vmatmul.mubr.bf16.vlgmr.msra.gmra.mrb[0].mxu0 %v76_v22  ;;  %714 = vmatmul.mubr.bf16.vlgmr.msra.gmra.mrb[0].mxu1 %v84_v23 }
  0x48   :  { %701 = vmatprep.mubr.bf16.mxu0 %v77_v24  ;;  %717 = vmatprep.mubr.bf16.mxu1 %v85_v25 }
  0x4f   :  { %702 = vmatmul.mubr.bf16.gmra.mrb[4].mxu0 %v78_v34  ;;  %718 = vmatmul.mubr.bf16.gmra.mrb[4].mxu1 %v86_v35 }
  0x50   :  { %705 = vmatprep.mubr.bf16.mxu0 %v79_v36  ;;  %721 = vmatprep.mubr.bf16.mxu1 %v87_v37 }
  0x57   :  { %706 = vmatmul.mubr.bf16.gmra.mrb[8].mxu0 %v80_v46  ;;  %722 = vmatmul.mubr.bf16.gmra.mrb[8].mxu1 %v88_v47 }
  0x58   :  { %709 = vmatprep.mubr.bf16.mxu0 %v81_v48  ;;  %725 = vmatprep.mubr.bf16.mxu1 %v89_v49 }
  0x5f   :  { %710 = vmatmul.mubr.bf16.gmra.mrb[12].mxu0 %v82_v54  ;;  %726 = vmatmul.mubr.bf16.gmra.mrb[12].mxu1 %v90_v55 }
 0x11a   :  { %v699_v56 = vpop.f32.mrb[0].mxu0  ;;  %v715_v58 = vpop.f32.mrb[0].mxu1 }
 0x11b   :  { %v196_v59 = vpop.f32.mrb[1].mxu0  ;;  %v260_v60 = vpop.f32.mrb[1].mxu1  ;;  %v205_v63 = vadd.f32 %v699_v56, %v860_v57  ;;  %v269_v0 = vadd.f32 %v715_v58, %v860_v57 }
 0x11c   :  { %v700_v61 = vpop.f32.mrb[2].mxu0  ;;  %v716_v62 = vpop.f32.mrb[2].mxu1  ;;  %v197_v5 = vadd.f32 %v860_v57, %v196_v59  ;;  %v261_v6 = vadd.f32 %v860_v57, %v260_v60 }
 0x11d   :  { %v208_v1 = vadd.f32 %v700_v61, %v860_v57  ;;  %v272_v2 = vadd.f32 %v716_v62, %v860_v57  ;;  %v199_v3 = vpop.f32.mrb[3].mxu0  ;;  %v263_v4 = vpop.f32.mrb[3].mxu1 }
 0x11e   :  { %v200_v7 = vadd.f32 %v860_v57, %v199_v3  ;;  %v264_v8 = vadd.f32 %v860_v57, %v263_v4 }
 0x11f   :  { %v570_v9 = vpack.c.bf16 %v208_v1, %v205_v63  ;;  %v610_v10 = vpack.c.bf16 %v272_v2, %v269_v0 }
 0x120   :  { %v565_v11 = vpack.c.bf16 %v200_v7, %v197_v5  ;;  %v605_v12 = vpack.c.bf16 %v264_v8, %v261_v6 }
 0x121   :  { %642 = vst [vmem:[%s945_s3 + $0x8] sm:$0xff] %v570_v9   ;;  %650 = vst [vmem:[%s945_s3 + $0x48] sm:$0xff] %v610_v10  }
 0x122   :  { %566 = vst [vmem:[%s945_s3] sm:$0xff] %v565_v11   ;;  %649 = vst [vmem:[%s945_s3 + $0x40] sm:$0xff] %v605_v12   ;;  %v703_v13 = vpop.f32.mrb[4].mxu0  ;;  %v719_v14 = vpop.f32.mrb[4].mxu1 }
 0x123   :  { %v212_v15 = vpop.f32.mrb[5].mxu0  ;;  %v276_v16 = vpop.f32.mrb[5].mxu1  ;;  %v221_v19 = vadd.f32 %v703_v13, %v860_v57  ;;  %v285_v20 = vadd.f32 %v719_v14, %v860_v57 }
 0x124   :  { %v704_v17 = vpop.f32.mrb[6].mxu0  ;;  %v720_v18 = vpop.f32.mrb[6].mxu1  ;;  %v213_v25 = vadd.f32 %v860_v57, %v212_v15  ;;  %v277_v26 = vadd.f32 %v860_v57, %v276_v16 }
 0x125   :  { %v224_v21 = vadd.f32 %v704_v17, %v860_v57  ;;  %v288_v22 = vadd.f32 %v720_v18, %v860_v57  ;;  %v215_v23 = vpop.f32.mrb[7].mxu0  ;;  %v279_v24 = vpop.f32.mrb[7].mxu1 }
 0x126   :  { %v216_v27 = vadd.f32 %v860_v57, %v215_v23  ;;  %v280_v28 = vadd.f32 %v860_v57, %v279_v24 }
 0x127   :  { %v580_v29 = vpack.c.bf16 %v224_v21, %v221_v19  ;;  %v620_v30 = vpack.c.bf16 %v288_v22, %v285_v20 }
 0x128   :  { %v575_v31 = vpack.c.bf16 %v216_v27, %v213_v25  ;;  %v615_v32 = vpack.c.bf16 %v280_v28, %v277_v26 }
 0x129   :  { %644 = vst [vmem:[%s945_s3 + $0x18] sm:$0xff] %v580_v29   ;;  %652 = vst [vmem:[%s945_s3 + $0x58] sm:$0xff] %v620_v30  }
 0x12a   :  { %643 = vst [vmem:[%s945_s3 + $0x10] sm:$0xff] %v575_v31   ;;  %651 = vst [vmem:[%s945_s3 + $0x50] sm:$0xff] %v615_v32   ;;  %v707_v33 = vpop.f32.mrb[8].mxu0  ;;  %v723_v34 = vpop.f32.mrb[8].mxu1 }
 0x12b   :  { %v228_v35 = vpop.f32.mrb[9].mxu0  ;;  %v292_v36 = vpop.f32.mrb[9].mxu1  ;;  %v237_v39 = vadd.f32 %v707_v33, %v860_v57  ;;  %v301_v40 = vadd.f32 %v723_v34, %v860_v57 }
 0x12c   :  { %v708_v37 = vpop.f32.mrb[10].mxu0  ;;  %v724_v38 = vpop.f32.mrb[10].mxu1  ;;  %v229_v45 = vadd.f32 %v860_v57, %v228_v35  ;;  %v293_v46 = vadd.f32 %v860_v57, %v292_v36 }
 0x12d   :  { %v240_v41 = vadd.f32 %v708_v37, %v860_v57  ;;  %v304_v42 = vadd.f32 %v724_v38, %v860_v57  ;;  %v231_v43 = vpop.f32.mrb[11].mxu0  ;;  %v295_v44 = vpop.f32.mrb[11].mxu1 }
 0x12e   :  { %v232_v47 = vadd.f32 %v860_v57, %v231_v43  ;;  %v296_v48 = vadd.f32 %v860_v57, %v295_v44 }
 0x12f   :  { %v590_v49 = vpack.c.bf16 %v240_v41, %v237_v39  ;;  %v630_v50 = vpack.c.bf16 %v304_v42, %v301_v40 }
 0x130   :  { %v585_v51 = vpack.c.bf16 %v232_v47, %v229_v45  ;;  %v625_v52 = vpack.c.bf16 %v296_v48, %v293_v46 }
 0x131   :  { %646 = vst [vmem:[%s945_s3 + $0x28] sm:$0xff] %v590_v49   ;;  %654 = vst [vmem:[%s945_s3 + $0x68] sm:$0xff] %v630_v50  }
 0x132   :  { %645 = vst [vmem:[%s945_s3 + $0x20] sm:$0xff] %v585_v51   ;;  %653 = vst [vmem:[%s945_s3 + $0x60] sm:$0xff] %v625_v52   ;;  %v711_v53 = vpop.f32.mrb[12].mxu0  ;;  %v727_v54 = vpop.f32.mrb[12].mxu1 }
 0x133   :  { %v244_v55 = vpop.f32.mrb[13].mxu0  ;;  %v308_v56 = vpop.f32.mrb[13].mxu1  ;;  %v253_v60 = vadd.f32 %v711_v53, %v860_v57  ;;  %v317_v61 = vadd.f32 %v727_v54, %v860_v57 }
 0x134   :  { %v712_v58 = vpop.f32.mrb[14].mxu0  ;;  %v728_v59 = vpop.f32.mrb[14].mxu1  ;;  %v245_v2 = vadd.f32 %v860_v57, %v244_v55  ;;  %v309_v3 = vadd.f32 %v860_v57, %v308_v56 }
 0x135   :  { %v256_v62 = vadd.f32 %v712_v58, %v860_v57  ;;  %v320_v63 = vadd.f32 %v728_v59, %v860_v57  ;;  %v247_v0 = vpop.f32.mrb[15].mxu0  ;;  %v311_v1 = vpop.f32.mrb[15].mxu1 }
 0x136   :  { %v248_v4 = vadd.f32 %v860_v57, %v247_v0  ;;  %v312_v5 = vadd.f32 %v860_v57, %v311_v1 }
 0x137   :  { %v600_v6 = vpack.c.bf16 %v256_v62, %v253_v60  ;;  %v640_v7 = vpack.c.bf16 %v320_v63, %v317_v61 }
 0x138   :  { %v595_v8 = vpack.c.bf16 %v248_v4, %v245_v2  ;;  %v635_v9 = vpack.c.bf16 %v312_v5, %v309_v3 }
 0x139   :  { %648 = vst [vmem:[%s945_s3 + $0x38] sm:$0xff] %v600_v6   ;;  %656 = vst [vmem:[%s945_s3 + $0x78] sm:$0xff] %v640_v7  }
 0x13a   :  { %647 = vst [vmem:[%s945_s3 + $0x30] sm:$0xff] %v595_v8   ;;  %655 = vst [vmem:[%s945_s3 + $0x70] sm:$0xff] %v635_v9  }
 0x13b   :  { %487 = vsyncpa [#allocation3], 1 }
 0x13c   :  { %488 = vsyncpa [#allocation5], 1 }

// kernel: cross_attention.5
= control target key start
LH: loop header
LB: loop body
LE: loop exit
PB: predicated region body
PF: predicated region fallthrough
CT: control target
= control target key end

     0   :  { %s948_s1 = inlined_call_operand.vmem [shape: bf16[128,128], index: 1, kind: input, shape index: {}]   ;;  %s949_s0 = inlined_call_operand.vmem [shape: f32[256,128], index: 0, kind: input, shape index: {}]   ;;  %s950_s2 = inlined_call_operand.vmem [shape: f32[1,128], index: 2, kind: input, shape index: {}]   ;;  %s951_s3 = inlined_call_operand.vmem [shape: bf16[256,128], index: 3, kind: output, shape index: {}]  }
   0x1   :  { %v715_v0 = vld [vmem:[%s948_s1] sm:$0xff]   ;;  %v716_v1 = vld [vmem:[%s948_s1 + $0x8] sm:$0xff]   ;;  %v717_v2 = vld [vmem:[%s948_s1 + $0x10] sm:$0xff]  }
   0x2   :  { %651 = vmatprep.subr.bf16.mxu0 %v715_v0  ;;  %699 = vmatprep.subr.bf16.mxu1 %v715_v0  ;;  %v718_v3 = vld [vmem:[%s948_s1 + $0x18] sm:$0xff]   ;;  %v15_v4 = vld [vmem:[%s949_s0] sm:$0xff]  ;;  %v16_v5 = vld [vmem:[%s949_s0 + $0x8] sm:$0xff] }
   0x3   :  { %652 = vmatpush3.bf16.msra.mxu0 %v715_v0  ;;  %707 = vmatpush3.bf16.msra.mxu1 %v715_v0  ;;  %v31_v6 = vld [vmem:[%s949_s0 + $0x80] sm:$0xff]  ;;  %v47_v7 = vpack.c.bf16 %v16_v5, %v15_v4  ;;  %v32_v8 = vld [vmem:[%s949_s0 + $0x88] sm:$0xff]  ;;  %v721_v12 = vld [vmem:[%s948_s1 + $0x30] sm:$0xff]  }
   0x4   :  { %653 = vmatprep.subr.bf16.mxu0 %v716_v1  ;;  %700 = vmatprep.subr.bf16.mxu1 %v716_v1  ;;  %v55_v9 = vpack.c.bf16 %v32_v8, %v31_v6  ;;  %v719_v10 = vld [vmem:[%s948_s1 + $0x20] sm:$0xff]   ;;  %v720_v11 = vld [vmem:[%s948_s1 + $0x28] sm:$0xff]   ;;  %v722_v13 = vld [vmem:[%s948_s1 + $0x38] sm:$0xff]  }
   0x5   :  { %667 = vmatprep.mubr.bf16.mxu0 %v47_v7  ;;  %v17_v14 = vld [vmem:[%s949_s0 + $0x10] sm:$0xff]  ;;  %v18_v15 = vld [vmem:[%s949_s0 + $0x18] sm:$0xff]  ;;  %v19_v18 = vld [vmem:[%s949_s0 + $0x20] sm:$0xff] }
   0x6   :  { %683 = vmatprep.mubr.bf16.mxu1 %v55_v9  ;;  %v33_v16 = vld [vmem:[%s949_s0 + $0x90] sm:$0xff]  ;;  %v34_v17 = vld [vmem:[%s949_s0 + $0x98] sm:$0xff]  ;;  %v20_v19 = vld [vmem:[%s949_s0 + $0x28] sm:$0xff]  ;;  %v48_v22 = vpack.c.bf16 %v18_v15, %v17_v14 }
   0x7   :  { %654 = vmatpush3.bf16.msra.mxu0 %v716_v1  ;;  %708 = vmatpush3.bf16.msra.mxu1 %v716_v1  ;;  %v35_v20 = vld [vmem:[%s949_s0 + $0xa0] sm:$0xff]  ;;  %v36_v21 = vld [vmem:[%s949_s0 + $0xa8] sm:$0xff]  ;;  %v56_v23 = vpack.c.bf16 %v34_v17, %v33_v16  ;;  %v49_v24 = vpack.c.bf16 %v20_v19, %v19_v18  ;;  %v21_v26 = vld [vmem:[%s949_s0 + $0x30] sm:$0xff] }
   0x8   :  { %655 = vmatprep.subr.bf16.mxu0 %v717_v2  ;;  %701 = vmatprep.subr.bf16.mxu1 %v717_v2  ;;  %v57_v25 = vpack.c.bf16 %v36_v21, %v35_v20  ;;  %v22_v27 = vld [vmem:[%s949_s0 + $0x38] sm:$0xff]  ;;  %v37_v28 = vld [vmem:[%s949_s0 + $0xb0] sm:$0xff]  ;;  %v23_v30 = vld [vmem:[%s949_s0 + $0x40] sm:$0xff] }
   0x9   :  { %v38_v29 = vld [vmem:[%s949_s0 + $0xb8] sm:$0xff]  ;;  %v24_v31 = vld [vmem:[%s949_s0 + $0x48] sm:$0xff]  ;;  %v39_v32 = vld [vmem:[%s949_s0 + $0xc0] sm:$0xff]  ;;  %v50_v34 = vpack.c.bf16 %v22_v27, %v21_v26 }
   0xa   :  { %v40_v33 = vld [vmem:[%s949_s0 + $0xc8] sm:$0xff]  ;;  %v58_v35 = vpack.c.bf16 %v38_v29, %v37_v28  ;;  %v51_v36 = vpack.c.bf16 %v24_v31, %v23_v30  ;;  %v25_v38 = vld [vmem:[%s949_s0 + $0x50] sm:$0xff]  ;;  %v26_v39 = vld [vmem:[%s949_s0 + $0x58] sm:$0xff] }
   0xb   :  { %656 = vmatpush3.bf16.msra.mxu0 %v717_v2  ;;  %709 = vmatpush3.bf16.msra.mxu1 %v717_v2  ;;  %v59_v37 = vpack.c.bf16 %v40_v33, %v39_v32  ;;  %v41_v40 = vld [vmem:[%s949_s0 + $0xd0] sm:$0xff]  ;;  %v42_v41 = vld [vmem:[%s949_s0 + $0xd8] sm:$0xff]  ;;  %v27_v42 = vld [vmem:[%s949_s0 + $0x60] sm:$0xff]  ;;  %v52_v46 = vpack.c.bf16 %v26_v39, %v25_v38 }
   0xc   :  { %657 = vmatprep.subr.bf16.mxu0 %v718_v3  ;;  %702 = vmatprep.subr.bf16.mxu1 %v718_v3  ;;  %v28_v43 = vld [vmem:[%s949_s0 + $0x68] sm:$0xff]  ;;  %v43_v44 = vld [vmem:[%s949_s0 + $0xe0] sm:$0xff]  ;;  %v60_v47 = vpack.c.bf16 %v42_v41, %v41_v40  ;;  %v29_v50 = vld [vmem:[%s949_s0 + $0x70] sm:$0xff] }
   0xd   :  { %v44_v45 = vld [vmem:[%s949_s0 + $0xe8] sm:$0xff]  ;;  %v53_v48 = vpack.c.bf16 %v28_v43, %v27_v42  ;;  %v30_v51 = vld [vmem:[%s949_s0 + $0x78] sm:$0xff]  ;;  %v45_v52 = vld [vmem:[%s949_s0 + $0xf0] sm:$0xff] }
   0xe   :  { %v61_v49 = vpack.c.bf16 %v44_v45, %v43_v44  ;;  %v46_v53 = vld [vmem:[%s949_s0 + $0xf8] sm:$0xff]  ;;  %v54_v54 = vpack.c.bf16 %v30_v51, %v29_v50  ;;  %v866_v57 = vld [vmem:[%s950_s2] ss:$0 sm:$0xff] }
   0xf   :  { %658 = vmatpush3.bf16.msra.mxu0 %v718_v3  ;;  %710 = vmatpush3.bf16.msra.mxu1 %v718_v3  ;;  %v62_v55 = vpack.c.bf16 %v46_v53, %v45_v52 }
  0x10   :  { %659 = vmatprep.subr.bf16.mxu0 %v719_v10  ;;  %703 = vmatprep.subr.bf16.mxu1 %v719_v10 }
  0x13   :  { %660 = vmatpush3.bf16.msra.mxu0 %v719_v10  ;;  %711 = vmatpush3.bf16.msra.mxu1 %v719_v10 }
  0x14   :  { %661 = vmatprep.subr.bf16.mxu0 %v720_v11  ;;  %704 = vmatprep.subr.bf16.mxu1 %v720_v11 }
  0x17   :  { %662 = vmatpush3.bf16.msra.mxu0 %v720_v11  ;;  %712 = vmatpush3.bf16.msra.mxu1 %v720_v11 }
  0x18   :  { %663 = vmatprep.subr.bf16.mxu0 %v721_v12  ;;  %705 = vmatprep.subr.bf16.mxu1 %v721_v12 }
  0x1b   :  { %664 = vmatpush3.bf16.msra.mxu0 %v721_v12  ;;  %713 = vmatpush3.bf16.msra.mxu1 %v721_v12 }
  0x1c   :  { %665 = vmatprep.subr.bf16.mxu0 %v722_v13  ;;  %706 = vmatprep.subr.bf16.mxu1 %v722_v13 }
  0x1f   :  { %666 = vmatpush3.bf16.msra.mxu0 %v722_v13  ;;  %714 = vmatpush3.bf16.msra.mxu1 %v722_v13 }
  0x22   :  { %668 = vmatmul.mubr.bf16.vlgmr.msra.gmra.mrb[0].mxu0 %v48_v22  ;;  %684 = vmatmul.mubr.bf16.vlgmr.msra.gmra.mrb[0].mxu1 %v56_v23 }
  0x23   :  { %671 = vmatprep.mubr.bf16.mxu0 %v49_v24  ;;  %687 = vmatprep.mubr.bf16.mxu1 %v57_v25 }
  0x2a   :  { %672 = vmatmul.mubr.bf16.gmra.mrb[4].mxu0 %v50_v34  ;;  %688 = vmatmul.mubr.bf16.gmra.mrb[4].mxu1 %v58_v35 }
  0x2b   :  { %675 = vmatprep.mubr.bf16.mxu0 %v51_v36  ;;  %691 = vmatprep.mubr.bf16.mxu1 %v59_v37 }
  0x32   :  { %676 = vmatmul.mubr.bf16.gmra.mrb[8].mxu0 %v52_v46  ;;  %692 = vmatmul.mubr.bf16.gmra.mrb[8].mxu1 %v60_v47 }
  0x33   :  { %679 = vmatprep.mubr.bf16.mxu0 %v53_v48  ;;  %695 = vmatprep.mubr.bf16.mxu1 %v61_v49 }
  0x3a   :  { %680 = vmatmul.mubr.bf16.gmra.mrb[12].mxu0 %v54_v54  ;;  %696 = vmatmul.mubr.bf16.gmra.mrb[12].mxu1 %v62_v55 }
  0xf5   :  { %v669_v56 = vpop.f32.mrb[0].mxu0  ;;  %v685_v58 = vpop.f32.mrb[0].mxu1 }
  0xf6   :  { %v168_v59 = vpop.f32.mrb[1].mxu0  ;;  %v232_v60 = vpop.f32.mrb[1].mxu1  ;;  %v177_v63 = vadd.f32 %v669_v56, %v866_v57  ;;  %v241_v0 = vadd.f32 %v685_v58, %v866_v57 }
  0xf7   :  { %v670_v61 = vpop.f32.mrb[2].mxu0  ;;  %v686_v62 = vpop.f32.mrb[2].mxu1  ;;  %v169_v5 = vadd.f32 %v866_v57, %v168_v59  ;;  %v233_v6 = vadd.f32 %v866_v57, %v232_v60 }
  0xf8   :  { %v180_v1 = vadd.f32 %v670_v61, %v866_v57  ;;  %v244_v2 = vadd.f32 %v686_v62, %v866_v57  ;;  %v171_v3 = vpop.f32.mrb[3].mxu0  ;;  %v235_v4 = vpop.f32.mrb[3].mxu1 }
  0xf9   :  { %v172_v7 = vadd.f32 %v866_v57, %v171_v3  ;;  %v236_v8 = vadd.f32 %v866_v57, %v235_v4 }
  0xfa   :  { %v540_v9 = vpack.c.bf16 %v180_v1, %v177_v63  ;;  %v580_v10 = vpack.c.bf16 %v244_v2, %v241_v0 }
  0xfb   :  { %v535_v11 = vpack.c.bf16 %v172_v7, %v169_v5  ;;  %v575_v12 = vpack.c.bf16 %v236_v8, %v233_v6 }
  0xfc   :  { %612 = vst [vmem:[%s951_s3 + $0x8] sm:$0xff] %v540_v9   ;;  %620 = vst [vmem:[%s951_s3 + $0x48] sm:$0xff] %v580_v10  }
  0xfd   :  { %536 = vst [vmem:[%s951_s3] sm:$0xff] %v535_v11   ;;  %619 = vst [vmem:[%s951_s3 + $0x40] sm:$0xff] %v575_v12   ;;  %v673_v13 = vpop.f32.mrb[4].mxu0  ;;  %v689_v14 = vpop.f32.mrb[4].mxu1 }
  0xfe   :  { %v184_v15 = vpop.f32.mrb[5].mxu0  ;;  %v248_v16 = vpop.f32.mrb[5].mxu1  ;;  %v193_v19 = vadd.f32 %v673_v13, %v866_v57  ;;  %v257_v20 = vadd.f32 %v689_v14, %v866_v57 }
  0xff   :  { %v674_v17 = vpop.f32.mrb[6].mxu0  ;;  %v690_v18 = vpop.f32.mrb[6].mxu1  ;;  %v185_v25 = vadd.f32 %v866_v57, %v184_v15  ;;  %v249_v26 = vadd.f32 %v866_v57, %v248_v16 }
 0x100   :  { %v196_v21 = vadd.f32 %v674_v17, %v866_v57  ;;  %v260_v22 = vadd.f32 %v690_v18, %v866_v57  ;;  %v187_v23 = vpop.f32.mrb[7].mxu0  ;;  %v251_v24 = vpop.f32.mrb[7].mxu1 }
 0x101   :  { %v188_v27 = vadd.f32 %v866_v57, %v187_v23  ;;  %v252_v28 = vadd.f32 %v866_v57, %v251_v24 }
 0x102   :  { %v550_v29 = vpack.c.bf16 %v196_v21, %v193_v19  ;;  %v590_v30 = vpack.c.bf16 %v260_v22, %v257_v20 }
 0x103   :  { %v545_v31 = vpack.c.bf16 %v188_v27, %v185_v25  ;;  %v585_v32 = vpack.c.bf16 %v252_v28, %v249_v26 }
 0x104   :  { %614 = vst [vmem:[%s951_s3 + $0x18] sm:$0xff] %v550_v29   ;;  %622 = vst [vmem:[%s951_s3 + $0x58] sm:$0xff] %v590_v30  }
 0x105   :  { %613 = vst [vmem:[%s951_s3 + $0x10] sm:$0xff] %v545_v31   ;;  %621 = vst [vmem:[%s951_s3 + $0x50] sm:$0xff] %v585_v32   ;;  %v677_v33 = vpop.f32.mrb[8].mxu0  ;;  %v693_v34 = vpop.f32.mrb[8].mxu1 }
 0x106   :  { %v200_v35 = vpop.f32.mrb[9].mxu0  ;;  %v264_v36 = vpop.f32.mrb[9].mxu1  ;;  %v209_v39 = vadd.f32 %v677_v33, %v866_v57  ;;  %v273_v40 = vadd.f32 %v693_v34, %v866_v57 }
 0x107   :  { %v678_v37 = vpop.f32.mrb[10].mxu0  ;;  %v694_v38 = vpop.f32.mrb[10].mxu1  ;;  %v201_v45 = vadd.f32 %v866_v57, %v200_v35  ;;  %v265_v46 = vadd.f32 %v866_v57, %v264_v36 }
 0x108   :  { %v212_v41 = vadd.f32 %v678_v37, %v866_v57  ;;  %v276_v42 = vadd.f32 %v694_v38, %v866_v57  ;;  %v203_v43 = vpop.f32.mrb[11].mxu0  ;;  %v267_v44 = vpop.f32.mrb[11].mxu1 }
 0x109   :  { %v204_v47 = vadd.f32 %v866_v57, %v203_v43  ;;  %v268_v48 = vadd.f32 %v866_v57, %v267_v44 }
 0x10a   :  { %v560_v49 = vpack.c.bf16 %v212_v41, %v209_v39  ;;  %v600_v50 = vpack.c.bf16 %v276_v42, %v273_v40 }
 0x10b   :  { %v555_v51 = vpack.c.bf16 %v204_v47, %v201_v45  ;;  %v595_v52 = vpack.c.bf16 %v268_v48, %v265_v46 }
 0x10c   :  { %616 = vst [vmem:[%s951_s3 + $0x28] sm:$0xff] %v560_v49   ;;  %624 = vst [vmem:[%s951_s3 + $0x68] sm:$0xff] %v600_v50  }
 0x10d   :  { %615 = vst [vmem:[%s951_s3 + $0x20] sm:$0xff] %v555_v51   ;;  %623 = vst [vmem:[%s951_s3 + $0x60] sm:$0xff] %v595_v52   ;;  %v681_v53 = vpop.f32.mrb[12].mxu0  ;;  %v697_v54 = vpop.f32.mrb[12].mxu1 }
 0x10e   :  { %v216_v55 = vpop.f32.mrb[13].mxu0  ;;  %v280_v56 = vpop.f32.mrb[13].mxu1  ;;  %v225_v60 = vadd.f32 %v681_v53, %v866_v57  ;;  %v289_v61 = vadd.f32 %v697_v54, %v866_v57 }
 0x10f   :  { %v682_v58 = vpop.f32.mrb[14].mxu0  ;;  %v698_v59 = vpop.f32.mrb[14].mxu1  ;;  %v217_v2 = vadd.f32 %v866_v57, %v216_v55  ;;  %v281_v3 = vadd.f32 %v866_v57, %v280_v56 }
 0x110   :  { %v228_v62 = vadd.f32 %v682_v58, %v866_v57  ;;  %v292_v63 = vadd.f32 %v698_v59, %v866_v57  ;;  %v219_v0 = vpop.f32.mrb[15].mxu0  ;;  %v283_v1 = vpop.f32.mrb[15].mxu1 }
 0x111   :  { %v220_v4 = vadd.f32 %v866_v57, %v219_v0  ;;  %v284_v5 = vadd.f32 %v866_v57, %v283_v1 }
 0x112   :  { %v570_v6 = vpack.c.bf16 %v228_v62, %v225_v60  ;;  %v610_v7 = vpack.c.bf16 %v292_v63, %v289_v61 }
 0x113   :  { %v565_v8 = vpack.c.bf16 %v220_v4, %v217_v2  ;;  %v605_v9 = vpack.c.bf16 %v284_v5, %v281_v3 }
 0x114   :  { %618 = vst [vmem:[%s951_s3 + $0x38] sm:$0xff] %v570_v6   ;;  %626 = vst [vmem:[%s951_s3 + $0x78] sm:$0xff] %v610_v7  }
 0x115   :  { %617 = vst [vmem:[%s951_s3 + $0x30] sm:$0xff] %v565_v8   ;;  %625 = vst [vmem:[%s951_s3 + $0x70] sm:$0xff] %v605_v9  }

// kernel: cross_attention.7
= control target key start
LH: loop header
LB: loop body
LE: loop exit
PB: predicated region body
PF: predicated region fallthrough
CT: control target
= control target key end

     0   :  { %10 = vsyncpa [#allocation3], 0  ;;  %s1949_s0 = inlined_call_operand.vmem [shape: bf16[2,128,128], index: 0, kind: input, shape index: {}]   ;;  %s1950_s1 = inlined_call_operand.vmem [shape: bf16[2,128,128], index: 1, kind: input, shape index: {}]   ;;  %s1951_s2 = inlined_call_operand.vmem [shape: bf16[2,128,128], index: 2, kind: input, shape index: {}]   ;;  %s1952_s3 = inlined_call_operand.hbm [shape: f32[2,128,128], index: 3, kind: output, shape index: {0}]   ;;  %s1953_s4 = inlined_call_operand.hbm [shape: bf16[2,128,128], index: 4, kind: output, shape index: {1}]  }
   0x1   :  { %12 = vsyncpa [#allocation3 + $0x1], 0 }
   0x2   :  { %13 = vsyncpa [#allocation5], 0 }
   0x3   :  { %15 = vsyncpa [#allocation5 + $0x1], 0  ;;  %s1621_s15 = smov 0   ;;  %s1623_s16 = smov 0  }
   0x4   :  { %s1625_s17 = smov 0   ;;  %s1627_s18 = smov 0  }
   0x5   :  { %s1629_s19 = smov 0   ;;  %s1631_s20 = smov 0  }
   0x6 LB: > { %s1101_s21 = sadd.s32 4294967295, %s1588_s20   ;;  %s1102_s22 = sadd.s32 4294967294, %s1588_s20   ;;  %s1588_s20 = sphi %s1631_s20, %s21_s20   ;;  %s1584_s19 = sphi %s1629_s19, %s1960_s19   ;;  %s1580_s18 = sphi %s1627_s18, %s1959_s18   ;;  %s1576_s17 = sphi %s1625_s17, %s1958_s17   ;;  %s1572_s16 = sphi %s1623_s16, %s1957_s16   ;;  %s1568_s15 = sphi %s1621_s15, %s1956_s15  }
   0x7   : > { %s33_s23 = sadd.s32 1, %s1584_s19  ;;  %s122_s24 = sadd.s32 1, %s1576_s17 }
   0x8   : > { %p35_p0 = scmp.ge.s32.totalorder %s33_s23, 2  ;;  %p132_p1 = scmp.ne.s32.totalorder %s1576_s17, %s1572_s16 }
   0x9   : > { %p133_p2 = scmp.eq.s32.totalorder %s1101_s21, 1  ;;  %p138_p3 = scmp.ne.s32.totalorder %s1572_s16, %s1568_s15 }
   0xa   : > { %s1962_s23 = smov (%p35_p0, %s33_s23), 0  ;;  %p139_p5 = scmp.eq.s32.totalorder %s1102_s22, 1 }
   0xb   : > { %p1661_p4 = por %p133_p2, %p132_p1  ;;  %s117_s26 = ssub.s32 %s1584_s19, %s1962_s23 }
   0xc   : > { %p1105_p6 = scmp.ge.s32.totalorder %s1588_s20, 1  ;;  %p120_p7 = scmp.eq.s32.totalorder %s117_s26, 0 }
   0xd   : > { %p1668_p8 = por %p139_p5, %p138_p3  ;;  %p214_p9 = scmp.lt.s32.totalorder %s1588_s20, 3 }
   0xe   : > { %s1674_s28 = scalar_select %p120_p7, %s1576_s17, %s122_s24  }
   0xf   : > { %p215_p10 = pnand %p1105_p6, %p214_p9 }
  0x10   : > { %p260_p11 = scmp.lt.s32.totalorder (!%p215_p10), %s1580_s18, 1  ;;  %s1813_s14 = sand.u32 (!%p215_p10), 1, %s1572_s16  }
  0x11   : > { %218 = sbr.rel (%p215_p10) target bundleno = 884 (0x374), region = 32  ;;  %s1107_s21 = sshll.u32 (!%p215_p10), %s1813_s14, 6 }
  0x12   : > { %s1818_s22 = scalar_lea.vmem (!%p215_p10), [#allocation4], %s1107_s21  ;;  %s1182_s24 = sshll.u32 (!%p215_p10), %s1580_s18, 10 }
  0x13   : > { %s963_s26 = sshll.u32 (!%p215_p10), %s1818_s22, 4  ;;  %s1847_s5 = scalar_lea.hbm (!%p215_p10), %s1953_s4, %s1182_s24  ;;  %s1849_s26 = int_to_ptr.vmem [resolvable:$true] %s963_s26 }
  0x14   : > { %s930_s6 = scalar_lea.sflag (!%p215_p10), [#allocation5], %s1813_s14  ;;  %s1590_s8 = smov (!%p215_p10), [#allocation4]  }
  0x15   : > { %s1482_s9 = sshll.u32 (!%p215_p10), %s1590_s8, 4  ;;  %s1483_s9 = int_to_ptr.vmem [resolvable:$false] %s1482_s9 }
  0x16   : > { %p1485_p1 = scmp.lt.s32.totalorder (!%p215_p10), %s1849_s26, %s1483_s9 }
  0x18   : > { %s261_s29 = scalar_select %p260_p11, %s1580_s18, 1 }
  0x1a   : > { %s1678_s30 = sshll.u32 %s261_s29, 6 }
  0x1b   : > { %s273_s7 = scalar_lea.vmem %s1950_s1, %s1678_s30  ;;  %s1688_s10 = scalar_lea.vmem %s1949_s0, %s1678_s30 }
  0x1c   : > { %v1390_v0 = vld [vmem:[%s273_s7] sm:$0xff]   ;;  %v1391_v1 = vld [vmem:[%s273_s7 + $0x8] sm:$0xff]   ;;  %v1392_v2 = vld [vmem:[%s273_s7 + $0x10] sm:$0xff]   ;;  %s1741_s13 = scalar_lea.vmem %s1951_s2, %s1678_s30 }
  0x1d   : > { %1262 = vmatprep.subr.bf16.mxu0 %v1390_v0  ;;  %v1398_v3 = vld [vmem:[%s1688_s10] sm:$0xff]   ;;  %v1393_v4 = vld [vmem:[%s273_s7 + $0x18] sm:$0xff]   ;;  %v1395_v6 = vld [vmem:[%s273_s7 + $0x28] sm:$0xff]  }
  0x1e   : > { %1263 = vmatpush3.bf16.xpose.msra.mxu0 %v1390_v0  ;;  %1278 = vmatprep.mubr.bf16.mxu0 %v1398_v3  ;;  %v1394_v5 = vld [vmem:[%s273_s7 + $0x20] sm:$0xff]   ;;  %v1396_v7 = vld [vmem:[%s273_s7 + $0x30] sm:$0xff]   ;;  %v1397_v8 = vld [vmem:[%s273_s7 + $0x38] sm:$0xff]   ;;  %s1478_s7 = scalar_lea.vmem %s1849_s26, 1024 }
  0x1f   : > { %1264 = vmatprep.subr.bf16.mxu0 %v1391_v1  ;;  %v1399_v9 = vld [vmem:[%s1688_s10 + $0x8] sm:$0xff]   ;;  %v1400_v10 = vld [vmem:[%s1688_s10 + $0x10] sm:$0xff]   ;;  %v1401_v11 = vld [vmem:[%s1688_s10 + $0x18] sm:$0xff]   ;;  %p1479_p12 = scmp.ne.s32.totalorder %s1849_s26, %s1478_s7 }
  0x20   : > { %v1402_v12 = vld [vmem:[%s1688_s10 + $0x20] sm:$0xff]   ;;  %v1403_v13 = vld [vmem:[%s1688_s10 + $0x28] sm:$0xff]   ;;  %v1404_v14 = vld [vmem:[%s1688_s10 + $0x30] sm:$0xff]  }
  0x21   : > { %v1405_v15 = vld [vmem:[%s1688_s10 + $0x38] sm:$0xff]   ;;  %v1406_v48 = vld [vmem:[%s1741_s13] sm:$0xff]   ;;  %v1407_v49 = vld [vmem:[%s1741_s13 + $0x8] sm:$0xff]   ;;  %p1480_p13 = pnand %p1479_p12, %p1661_p4  ;;  %s1484_s10 = scalar_lea.vmem %s1483_s9, 2048 }
  0x22   : > { %1294 = vmatprep.subr.bf16.mxu1 %v1406_v48  ;;  %v1408_v50 = vld [vmem:[%s1741_s13 + $0x10] sm:$0xff]   ;;  %p1486_p2 = scmp.lt.s32.totalorder %s1484_s10, %s1478_s7 }
  0x23   : > { %1295 = vmatpush3.bf16.msra.mxu1 %v1406_v48  ;;  %v1410_v48 = vld [vmem:[%s1741_s13 + $0x20] sm:$0xff]   ;;  %p1481_p0 = pneg %p1480_p13 }
  0x24   : > { %1296 = vmatprep.subr.bf16.mxu1 %v1407_v49  ;;  %p1487_p3 = por %p1486_p2, %p1485_p1 }
  0x26   : > { %1265 = vmatpush3.bf16.xpose.msra.mxu0 %v1391_v1  ;;  %p1488_p5 = pnand %p1487_p3, %p1481_p0 }
  0x27   : > { %1266 = vmatprep.subr.bf16.mxu0 %v1392_v2  ;;  %1297 = vmatpush3.bf16.msra.mxu1 %v1407_v49 }
  0x28   : > { %1298 = vmatprep.subr.bf16.mxu1 %v1408_v50 }
  0x2b   : > { %1299 = vmatpush3.bf16.msra.mxu1 %v1408_v50  ;;  %v1411_v50 = vld [vmem:[%s1741_s13 + $0x28] sm:$0xff]  }
  0x2e   : > { %1267 = vmatpush3.bf16.xpose.msra.mxu0 %v1392_v2 }
  0x2f   : > { %1268 = vmatprep.subr.bf16.mxu0 %v1393_v4 }
  0x36   : > { %1269 = vmatpush3.bf16.xpose.msra.mxu0 %v1393_v4 }
  0x37   : > { %1270 = vmatprep.subr.bf16.mxu0 %v1394_v5 }
  0x3e   : > { %1271 = vmatpush3.bf16.xpose.msra.mxu0 %v1394_v5 }
  0x3f   : > { %1272 = vmatprep.subr.bf16.mxu0 %v1395_v6 }
  0x46   : > { %1273 = vmatpush3.bf16.xpose.msra.mxu0 %v1395_v6 }
  0x47   : > { %1274 = vmatprep.subr.bf16.mxu0 %v1396_v7 }
  0x4e   : > { %1275 = vmatpush3.bf16.xpose.msra.mxu0 %v1396_v7 }
  0x4f   : > { %1276 = vmatprep.subr.bf16.mxu0 %v1397_v8 }
  0x56   : > { %1277 = vmatpush3.bf16.xpose.msra.mxu0 %v1397_v8 }
  0x5d   : > { %1279 = vmatmul.mubr.bf16.vlgmr.msra.gmra.mrb[0].mxu0 %v1399_v9 }
  0x5e   : > { %1282 = vmatprep.mubr.bf16.mxu0 %v1400_v10 }
  0x65   : > { %1283 = vmatmul.mubr.bf16.gmra.mrb[4].mxu0 %v1401_v11 }
  0x66   : > { %1286 = vmatprep.mubr.bf16.mxu0 %v1402_v12 }
  0x6d   : > { %1287 = vmatmul.mubr.bf16.gmra.mrb[8].mxu0 %v1403_v13 }
  0x6e   : > { %1290 = vmatprep.mubr.bf16.mxu0 %v1404_v14 }
  0x75   : > { %1291 = vmatmul.mubr.bf16.gmra.mrb[12].mxu0 %v1405_v15 }
 0x130   : > { %v1280_v16 = vpop.f32.mrb[0].mxu0 }
 0x131   : > { %v1698_v17 = vmul.f32 0.088388346, %v1280_v16  ;;  %v460_v18 = vpop.f32.mrb[1].mxu0 }
 0x132   : > { %v523_v19 = vmul.f32 0.088388346, %v460_v18  ;;  %v1281_v20 = vpop.f32.mrb[2].mxu0 }
 0x133   : > { %543 = vmax.xlane.f32.xlu1 %v1698_v17  ;;  %v463_v21 = vpop.f32.mrb[3].mxu0  ;;  %v1701_v22 = vmul.f32 0.088388346, %v1281_v20 }
 0x134   : > { %539 = vmax.xlane.f32.xlu0 %v523_v19  ;;  %v524_v23 = vmul.f32 0.088388346, %v463_v21 }
 0x137   : > { %545 = vmax.xlane.f32.xlu1 %v1701_v22 }
 0x138   : > { %541 = vmax.xlane.f32.xlu0 %v524_v23  ;;  %v1284_v24 = vpop.f32.mrb[4].mxu0 }
 0x139   : > { %v476_v25 = vpop.f32.mrb[5].mxu0  ;;  %v1706_v30 = vmul.f32 0.088388346, %v1284_v24 }
 0x13a   : > { %v527_v26 = vmul.f32 0.088388346, %v476_v25  ;;  %v1285_v27 = vpop.f32.mrb[6].mxu0 }
 0x13b   : > { %v479_v28 = vpop.f32.mrb[7].mxu0  ;;  %v1709_v31 = vmul.f32 0.088388346, %v1285_v27 }
 0x13c   : > { %v1704_v29 = vmul.f32 0.088388346, %v479_v28  ;;  %547 = vmax.xlane.f32.xlu0 %v527_v26 }
 0x13e   : > { %549 = vmax.xlane.f32.xlu1 %v1704_v29 }
 0x140   : > { %551 = vmax.xlane.f32.xlu0 %v1706_v30  ;;  %v1288_v32 = vpop.f32.mrb[8].mxu0 }
 0x141   : > { %v492_v33 = vpop.f32.mrb[9].mxu0  ;;  %v1718_v38 = vmul.f32 0.088388346, %v1288_v32 }
 0x142   : > { %v1712_v34 = vmul.f32 0.088388346, %v492_v33  ;;  %553 = vmax.xlane.f32.xlu1 %v1709_v31  ;;  %v1289_v35 = vpop.f32.mrb[10].mxu0 }
 0x143   : > { %v495_v36 = vpop.f32.mrb[11].mxu0  ;;  %v1721_v39 = vmul.f32 0.088388346, %v1289_v35 }
 0x144   : > { %v1715_v37 = vmul.f32 0.088388346, %v495_v36  ;;  %555 = vmax.xlane.f32.xlu0 %v1712_v34 }
 0x146   : > { %557 = vmax.xlane.f32.xlu1 %v1715_v37 }
 0x148   : > { %559 = vmax.xlane.f32.xlu0 %v1718_v38  ;;  %v1292_v40 = vpop.f32.mrb[12].mxu0 }
 0x149   : > { %v508_v41 = vpop.f32.mrb[13].mxu0  ;;  %v1730_v46 = vmul.f32 0.088388346, %v1292_v40  ;;  %v1409_v40 = vld [vmem:[%s1741_s13 + $0x18] sm:$0xff]  }
 0x14a   : > { %v1724_v42 = vmul.f32 0.088388346, %v508_v41  ;;  %561 = vmax.xlane.f32.xlu1 %v1721_v39  ;;  %v1293_v43 = vpop.f32.mrb[14].mxu0  ;;  %1300 = vmatprep.subr.bf16.mxu1 %v1409_v40 }
 0x14b   : > { %v511_v44 = vpop.f32.mrb[15].mxu0  ;;  %v1733_v47 = vmul.f32 0.088388346, %v1293_v43  ;;  %1301 = vmatpush3.bf16.msra.mxu1 %v1409_v40 }
 0x14c   : > { %v1727_v45 = vmul.f32 0.088388346, %v511_v44  ;;  %563 = vmax.xlane.f32.xlu0 %v1724_v42  ;;  %1302 = vmatprep.subr.bf16.mxu1 %v1410_v48 }
 0x14e   : > { %565 = vmax.xlane.f32.xlu1 %v1727_v45 }
 0x14f   : > { %1303 = vmatpush3.bf16.msra.mxu1 %v1410_v48 }
 0x150   : > { %567 = vmax.xlane.f32.xlu0 %v1730_v46  ;;  %1304 = vmatprep.subr.bf16.mxu1 %v1411_v50 }
 0x152   : > { %569 = vmax.xlane.f32.xlu1 %v1733_v47 }
 0x153   : > { %1305 = vmatpush3.bf16.msra.mxu1 %v1411_v50 }
 0x1c0   : > { %v544_v51 = vpop.xlane.xlu1 %543 }
 0x1c1   : > { %v573_v52 = vsub.f32 %v1698_v17, %v544_v51  ;;  %v540_v53 = vpop.xlane.xlu0 %539 }
 0x1c2   : > { %v571_v54 = vsub.f32 %v523_v19, %v540_v53  ;;  %v1412_v53 = vld [vmem:[%s1741_s13 + $0x30] sm:$0xff]  }
 0x1c3   : > { %v591_v57 = vmul.f32 1.442695, %v573_v52  ;;  %1306 = vmatprep.subr.bf16.mxu1 %v1412_v53 }
 0x1c4   : > { %v587_v55 = vmul.f32 1.442695, %v571_v54  ;;  %v546_v56 = vpop.xlane.xlu1 %545  ;;  %1307 = vmatpush3.bf16.msra.mxu1 %v1412_v53 }
 0x1c5   : > { %v574_v58 = vsub.f32 %v1701_v22, %v546_v56  ;;  %v542_v59 = vpop.xlane.xlu0 %541 }
 0x1c6   : > { %1414 = vpow2.f32 %v587_v55  ;;  %v572_v60 = vsub.f32 %v524_v23, %v542_v59  ;;  %v1413_v55 = vld [vmem:[%s1741_s13 + $0x38] sm:$0xff]  }
 0x1c7   : > { %1416 = vpow2.f32 %v591_v57  ;;  %v593_v62 = vmul.f32 1.442695, %v574_v58  ;;  %1308 = vmatprep.subr.bf16.mxu1 %v1413_v55 }
 0x1c8   : > { %v589_v61 = vmul.f32 1.442695, %v572_v60  ;;  %1309 = vmatpush3.bf16.msra.mxu1 %v1413_v55 }
 0x1c9   : > { %v548_v63 = vpop.xlane.xlu0 %547 }
 0x1ca   : > { %1418 = vpow2.f32 %v589_v61  ;;  %v575_v0 = vsub.f32 %v527_v26, %v548_v63 }
 0x1cb   : > { %v550_v1 = vpop.xlane.xlu1 %549  ;;  %1420 = vpow2.f32 %v593_v62 }
 0x1cc   : > { %v595_v2 = vmul.f32 1.442695, %v575_v0  ;;  %v576_v3 = vsub.f32 %v1704_v29, %v550_v1 }
 0x1cd   : > { %v552_v4 = vpop.xlane.xlu0 %551 }
 0x1ce   : > { %1422 = vpow2.f32 %v595_v2  ;;  %v597_v5 = vmul.f32 1.442695, %v576_v3  ;;  %v577_v6 = vsub.f32 %v1706_v30, %v552_v4 }
 0x1cf   : > { %v554_v7 = vpop.xlane.xlu1 %553 }
 0x1d0   : > { %v1750_v8 = vpop.eup %1414  ;;  %v599_v9 = vmul.f32 1.442695, %v577_v6  ;;  %v578_v10 = vsub.f32 %v1709_v31, %v554_v7  ;;  %1424 = vpow2.f32 %v597_v5 }
 0x1d1   : > { %v556_v11 = vpop.xlane.xlu0 %555  ;;  %619 = vadd.xlane.f32.xlu0 %v1750_v8  ;;  %v1755_v14 = vpop.eup %1416 }
 0x1d2   : > { %1426 = vpow2.f32 %v599_v9  ;;  %v601_v12 = vmul.f32 1.442695, %v578_v10  ;;  %v579_v13 = vsub.f32 %v1712_v34, %v556_v11 }
 0x1d3   : > { %v558_v15 = vpop.xlane.xlu1 %557 }
 0x1d4   : > { %v1757_v16 = vpop.eup %1418  ;;  %v603_v17 = vmul.f32 1.442695, %v579_v13  ;;  %v580_v18 = vsub.f32 %v1715_v37, %v558_v15  ;;  %1428 = vpow2.f32 %v601_v12 }
 0x1d5   : > { %v560_v19 = vpop.xlane.xlu0 %559  ;;  %623 = vadd.xlane.f32.xlu0 %v1755_v14  ;;  %621 = vadd.xlane.f32.xlu1 %v1757_v16  ;;  %v1763_v22 = vpop.eup %1420 }
 0x1d6   : > { %1430 = vpow2.f32 %v603_v17  ;;  %v605_v20 = vmul.f32 1.442695, %v580_v18  ;;  %v581_v21 = vsub.f32 %v1718_v38, %v560_v19 }
 0x1d7   : > { %v562_v23 = vpop.xlane.xlu1 %561 }
 0x1d8   : > { %v1765_v24 = vpop.eup %1422  ;;  %v607_v25 = vmul.f32 1.442695, %v581_v21  ;;  %v582_v26 = vsub.f32 %v1721_v39, %v562_v23  ;;  %1432 = vpow2.f32 %v605_v20 }
 0x1d9   : > { %627 = vadd.xlane.f32.xlu0 %v1765_v24  ;;  %v564_v27 = vpop.xlane.xlu0 %563  ;;  %625 = vadd.xlane.f32.xlu1 %v1763_v22 }
 0x1da   : > { %1434 = vpow2.f32 %v607_v25  ;;  %v609_v28 = vmul.f32 1.442695, %v582_v26  ;;  %v583_v29 = vsub.f32 %v1724_v42, %v564_v27  ;;  %v1771_v30 = vpop.eup %1424 }
 0x1db   : > { %v566_v31 = vpop.xlane.xlu1 %565 }
 0x1dc   : > { %v1773_v32 = vpop.eup %1426  ;;  %v611_v33 = vmul.f32 1.442695, %v583_v29  ;;  %v584_v34 = vsub.f32 %v1727_v45, %v566_v31  ;;  %1436 = vpow2.f32 %v609_v28 }
 0x1dd   : > { %631 = vadd.xlane.f32.xlu0 %v1773_v32  ;;  %v568_v35 = vpop.xlane.xlu0 %567  ;;  %629 = vadd.xlane.f32.xlu1 %v1771_v30 }
 0x1de   : > { %1438 = vpow2.f32 %v611_v33  ;;  %v613_v36 = vmul.f32 1.442695, %v584_v34  ;;  %v585_v37 = vsub.f32 %v1730_v46, %v568_v35  ;;  %v1779_v38 = vpop.eup %1428 }
 0x1df   : > { %v570_v39 = vpop.xlane.xlu1 %569 }
 0x1e0   : > { %v1782_v41 = vpop.eup %1430  ;;  %v615_v42 = vmul.f32 1.442695, %v585_v37  ;;  %v586_v43 = vsub.f32 %v1733_v47, %v570_v39  ;;  %1440 = vpow2.f32 %v613_v36 }
 0x1e1   : > { %635 = vadd.xlane.f32.xlu0 %v1782_v41  ;;  %633 = vadd.xlane.f32.xlu1 %v1779_v38 }
 0x1e2   : > { %1442 = vpow2.f32 %v615_v42  ;;  %v617_v44 = vmul.f32 1.442695, %v586_v43  ;;  %v1787_v45 = vpop.eup %1432 }
 0x1e4   : > { %v1789_v46 = vpop.eup %1434  ;;  %1444 = vpow2.f32 %v617_v44 }
 0x1e5   : > { %639 = vadd.xlane.f32.xlu0 %v1789_v46  ;;  %637 = vadd.xlane.f32.xlu1 %v1787_v45 }
 0x1e6   : > { %v1794_v47 = vpop.eup %1436 }
 0x1e8   : > { %v1796_v49 = vpop.eup %1438 }
 0x1e9   : > { %643 = vadd.xlane.f32.xlu0 %v1796_v49  ;;  %641 = vadd.xlane.f32.xlu1 %v1794_v47 }
 0x1ea   : > { %v1801_v51 = vpop.eup %1440 }
 0x1ec   : > { %v1803_v52 = vpop.eup %1442 }
 0x1ed   : > { %647 = vadd.xlane.f32.xlu0 %v1803_v52  ;;  %645 = vadd.xlane.f32.xlu1 %v1801_v51 }
 0x1ee   : > { %v1808_v54 = vpop.eup %1444 }
 0x1f1   : > { %649 = vadd.xlane.f32.xlu1 %v1808_v54 }
 0x25e   : > { %v620_v56 = vpop.xlane.xlu0 %619 }
 0x25f   : > { %1446 = vrcp.f32 %v620_v56 }
 0x262   : > { %v624_v57 = vpop.xlane.xlu0 %623  ;;  %v622_v58 = vpop.xlane.xlu1 %621 }
 0x263   : > { %1448 = vrcp.f32 %v622_v58 }
 0x264   : > { %1450 = vrcp.f32 %v624_v57 }
 0x266   : > { %v628_v59 = vpop.xlane.xlu0 %627  ;;  %v626_v60 = vpop.xlane.xlu1 %625 }
 0x267   : > { %1452 = vrcp.f32 %v626_v60 }
 0x268   : > { %1454 = vrcp.f32 %v628_v59 }
 0x269   : > { %v1447_v63 = vpop.eup %1446 }
 0x26a   : > { %v632_v61 = vpop.xlane.xlu0 %631  ;;  %v630_v62 = vpop.xlane.xlu1 %629  ;;  %v652_v3 = vmul.f32 %v1447_v63, %v1750_v8 }
 0x26b   : > { %1456 = vrcp.f32 %v630_v62 }
 0x26c   : > { %1458 = vrcp.f32 %v632_v61 }
 0x26d   : > { %v1449_v0 = vpop.eup %1448 }
 0x26e   : > { %v636_v1 = vpop.xlane.xlu0 %635  ;;  %v634_v2 = vpop.xlane.xlu1 %633  ;;  %v654_v4 = vmul.f32 %v1449_v0, %v1757_v16 }
 0x26f   : > { %v1451_v5 = vpop.eup %1450  ;;  %1460 = vrcp.f32 %v634_v2 }
 0x270   : > { %v683_v6 = vpack.c.bf16 %v654_v4, %v652_v3  ;;  %1462 = vrcp.f32 %v636_v1  ;;  %v656_v11 = vmul.f32 %v1451_v5, %v1755_v14 }
 0x271   : > { %v1453_v7 = vpop.eup %1452 }
 0x272   : > { %v640_v9 = vpop.xlane.xlu0 %639  ;;  %v638_v10 = vpop.xlane.xlu1 %637  ;;  %1187 = vst [vmem:[%s1818_s22] sm:$0xff] %v683_v6   ;;  %1310 = vmatprep.mubr.bf16.mxu1 %v683_v6  ;;  %v658_v12 = vmul.f32 %v1453_v7, %v1763_v22 }
 0x273   : > { %v1455_v8 = vpop.eup %1454  ;;  %1464 = vrcp.f32 %v638_v10 }
 0x274   : > { %v684_v13 = vpack.c.bf16 %v658_v12, %v656_v11  ;;  %1466 = vrcp.f32 %v640_v9  ;;  %v660_v18 = vmul.f32 %v1455_v8, %v1765_v24 }
 0x275   : > { %v1457_v15 = vpop.eup %1456 }
 0x276   : > { %v644_v16 = vpop.xlane.xlu0 %643  ;;  %v642_v17 = vpop.xlane.xlu1 %641  ;;  %1223 = vst [vmem:[%s1818_s22 + $0x8] sm:$0xff] %v684_v13   ;;  %1311 = vmatmul.mubr.bf16.vlgmr.msra.gmra.mrb[0].mxu1 %v684_v13  ;;  %v662_v19 = vmul.f32 %v1457_v15, %v1771_v30 }
 0x277   : > { %v1459_v20 = vpop.eup %1458  ;;  %1468 = vrcp.f32 %v642_v17 }
 0x278   : > { %v685_v14 = vpack.c.bf16 %v662_v19, %v660_v18  ;;  %1470 = vrcp.f32 %v644_v16  ;;  %v664_v25 = vmul.f32 %v1459_v20, %v1773_v32 }
 0x279   : > { %v1461_v21 = vpop.eup %1460 }
 0x27a   : > { %v648_v22 = vpop.xlane.xlu0 %647  ;;  %v646_v23 = vpop.xlane.xlu1 %645  ;;  %1224 = vst [vmem:[%s1818_s22 + $0x10] sm:$0xff] %v685_v14   ;;  %1314 = vmatprep.mubr.bf16.mxu1 %v685_v14  ;;  %v666_v26 = vmul.f32 %v1461_v21, %v1779_v38 }
 0x27b   : > { %v1463_v27 = vpop.eup %1462  ;;  %1472 = vrcp.f32 %v646_v23 }
 0x27c   : > { %1474 = vrcp.f32 %v648_v22  ;;  %v686_v24 = vpack.c.bf16 %v666_v26, %v664_v25  ;;  %v668_v30 = vmul.f32 %v1463_v27, %v1782_v41 }
 0x27d   : > { %v1465_v28 = vpop.eup %1464 }
 0x27e   : > { %v650_v29 = vpop.xlane.xlu1 %649  ;;  %1225 = vst [vmem:[%s1818_s22 + $0x18] sm:$0xff] %v686_v24   ;;  %1315 = vmatmul.mubr.bf16.gmra.mrb[4].mxu1 %v686_v24  ;;  %v670_v31 = vmul.f32 %v1465_v28, %v1787_v45  ;;  %v1467_v33 = vpop.eup %1466 }
 0x27f   : > { %1476 = vrcp.f32 %v650_v29  ;;  %v672_v35 = vmul.f32 %v1467_v33, %v1789_v46 }
 0x280   : > { %v687_v34 = vpack.c.bf16 %v670_v31, %v668_v30 }
 0x281   : > { %v1469_v32 = vpop.eup %1468 }
 0x282   : > { %1226 = vst [vmem:[%s1818_s22 + $0x20] sm:$0xff] %v687_v34   ;;  %1318 = vmatprep.mubr.bf16.mxu1 %v687_v34  ;;  %v674_v36 = vmul.f32 %v1469_v32, %v1794_v47  ;;  %v1471_v37 = vpop.eup %1470 }
 0x283   : > { %v676_v41 = vmul.f32 %v1471_v37, %v1796_v49 }
 0x284   : > { %v688_v38 = vpack.c.bf16 %v674_v36, %v672_v35 }
 0x285   : > { %v1473_v39 = vpop.eup %1472 }
 0x286   : > { %v1475_v40 = vpop.eup %1474  ;;  %1227 = vst [vmem:[%s1818_s22 + $0x28] sm:$0xff] %v688_v38   ;;  %1319 = vmatmul.mubr.bf16.gmra.mrb[8].mxu1 %v688_v38  ;;  %v678_v42 = vmul.f32 %v1473_v39, %v1801_v51 }
 0x287   : > { %v680_v45 = vmul.f32 %v1475_v40, %v1803_v52 }
 0x288   : > { %v689_v44 = vpack.c.bf16 %v678_v42, %v676_v41 }
 0x289   : > { %v1477_v43 = vpop.eup %1476 }
 0x28a   : > { %v682_v46 = vmul.f32 %v1477_v43, %v1808_v54  ;;  %1228 = vst [vmem:[%s1818_s22 + $0x30] sm:$0xff] %v689_v44   ;;  %1322 = vmatprep.mubr.bf16.mxu1 %v689_v44 }
 0x28c   : > { %v690_v48 = vpack.c.bf16 %v682_v46, %v680_v45 }
 0x28e   : > { %1229 = vst [vmem:[%s1818_s22 + $0x38] sm:$0xff] %v690_v48   ;;  %1323 = vmatmul.mubr.bf16.gmra.mrb[12].mxu1 %v690_v48 }
 0x28f   : > { %1491 = shalt.err (!%p1488_p5)
}
 0x290   : > { %s1492_s11 = scalar_lea.hbm %s1847_s5, 1024  ;;  %s1496_s21 = scalar_lea.hbm %s1953_s4, 2048 }
 0x291   : > { %p1493_p6 = scmp.ne.s32.totalorder %s1847_s5, %s1492_s11  ;;  %p1497_p10 = scmp.lt.u32.totalorder %s1847_s5, %s1953_s4 }
 0x292   : > { %p1498_p11 = scmp.lt.u32.totalorder %s1496_s21, %s1492_s11  ;;  %p1500_p13 = scmp.lt.u32.totalorder %s1492_s11, %s1847_s5 }
 0x293   : > { %p1494_p7 = pnand %p1493_p6, %p1661_p4 }
 0x294   : > { %p1499_p12 = por %p1498_p11, %p1497_p10 }
 0x295   : > { %p1495_p9 = pneg %p1494_p7 }
 0x296   : > { %p1501_p0 = por %p1500_p13, %p1499_p12 }
 0x298   : > { %p1502_p1 = pnand %p1501_p0, %p1495_p9 }
 0x29a   : > { %1505 = shalt.err (!%p1502_p1)
}
 0x29b   : > { %s1591_s29 = smov 64   ;;  %s1592_s30 = smov 4  }
 0x29c   : > { %1327 = dma.vmem_to_hbm [thread:$0]  (%p1661_p4), %s1849_s26, 1024, %s1847_s5, %s930_s6, %s1591_s29, %s1591_s29, %s1592_s30  }
 0x29d   : > { %s1106_s7 = sshll.u32 %s1813_s14, 7  ;;  %s1181_s26 = sshll.u32 %s1580_s18, 11 }
 0x29e   : > { %s1876_s8 = scalar_lea.vmem [#allocation2], %s1106_s7  ;;  %s1896_s10 = scalar_lea.hbm %s1952_s3, %s1181_s26 }
 0x29f   : > { %s945_s5 = sshll.u32 %s1876_s8, 4  ;;  %s925_s18 = scalar_lea.sflag [#allocation3], %s1813_s14  ;;  %s1898_s5 = int_to_ptr.vmem [resolvable:$true] %s945_s5 }
 0x2a0   : > { %s1506_s11 = scalar_lea.vmem %s1898_s5, 2048  ;;  %s1593_s12 = smov [#allocation2]  }
 0x2a1   : > { %p1507_p2 = scmp.ne.s32.totalorder %s1898_s5, %s1506_s11  ;;  %s1510_s13 = sshll.u32 %s1593_s12, 4  ;;  %s1511_s13 = int_to_ptr.vmem [resolvable:$false] %s1510_s13 }
 0x2a2   : > { %s1512_s21 = scalar_lea.vmem %s1511_s13, 4096  ;;  %p1513_p6 = scmp.lt.s32.totalorder %s1898_s5, %s1511_s13 }
 0x2a3   : > { %p1508_p3 = pnand %p1507_p2, %p1661_p4  ;;  %p1514_p7 = scmp.lt.s32.totalorder %s1512_s21, %s1506_s11 }
 0x2a5   : > { %p1509_p5 = pneg %p1508_p3  ;;  %p1515_p9 = por %p1514_p7, %p1513_p6 }
 0x2a7   : > { %p1516_p10 = pnand %p1515_p9, %p1509_p5 }
 0x349   : > { %v1312_v47 = vpop.f32.mrb[0].mxu1 }
 0x34a   : > { %910 = vst [vmem:[%s1876_s8 + $0x10] sm:$0xff] %v1312_v47  ;;  %v845_v49 = vpop.f32.mrb[1].mxu1 }
 0x34b   : > { %908 = vst [vmem:[%s1876_s8] sm:$0xff] %v845_v49  ;;  %v1313_v50 = vpop.f32.mrb[2].mxu1 }
 0x34c   : > { %911 = vst [vmem:[%s1876_s8 + $0x18] sm:$0xff] %v1313_v50  ;;  %v848_v51 = vpop.f32.mrb[3].mxu1 }
 0x34d   : > { %909 = vst [vmem:[%s1876_s8 + $0x8] sm:$0xff] %v848_v51 }
 0x351   : > { %v1316_v52 = vpop.f32.mrb[4].mxu1 }
 0x352   : > { %914 = vst [vmem:[%s1876_s8 + $0x30] sm:$0xff] %v1316_v52  ;;  %v861_v53 = vpop.f32.mrb[5].mxu1 }
 0x353   : > { %912 = vst [vmem:[%s1876_s8 + $0x20] sm:$0xff] %v861_v53  ;;  %v1317_v54 = vpop.f32.mrb[6].mxu1 }
 0x354   : > { %915 = vst [vmem:[%s1876_s8 + $0x38] sm:$0xff] %v1317_v54  ;;  %v864_v55 = vpop.f32.mrb[7].mxu1 }
 0x355   : > { %913 = vst [vmem:[%s1876_s8 + $0x28] sm:$0xff] %v864_v55 }
 0x359   : > { %v1320_v56 = vpop.f32.mrb[8].mxu1 }
 0x35a   : > { %918 = vst [vmem:[%s1876_s8 + $0x50] sm:$0xff] %v1320_v56  ;;  %v877_v57 = vpop.f32.mrb[9].mxu1 }
 0x35b   : > { %916 = vst [vmem:[%s1876_s8 + $0x40] sm:$0xff] %v877_v57  ;;  %v1321_v58 = vpop.f32.mrb[10].mxu1 }
 0x35c   : > { %919 = vst [vmem:[%s1876_s8 + $0x58] sm:$0xff] %v1321_v58  ;;  %v880_v59 = vpop.f32.mrb[11].mxu1 }
 0x35d   : > { %917 = vst [vmem:[%s1876_s8 + $0x48] sm:$0xff] %v880_v59 }
 0x361   : > { %v1324_v60 = vpop.f32.mrb[12].mxu1 }
 0x362   : > { %922 = vst [vmem:[%s1876_s8 + $0x70] sm:$0xff] %v1324_v60  ;;  %v893_v61 = vpop.f32.mrb[13].mxu1 }
 0x363   : > { %920 = vst [vmem:[%s1876_s8 + $0x60] sm:$0xff] %v893_v61  ;;  %v1325_v62 = vpop.f32.mrb[14].mxu1 }
 0x364   : > { %923 = vst [vmem:[%s1876_s8 + $0x78] sm:$0xff] %v1325_v62  ;;  %v896_v63 = vpop.f32.mrb[15].mxu1 }
 0x365   : > { %921 = vst [vmem:[%s1876_s8 + $0x68] sm:$0xff] %v896_v63 }
 0x366   : > { %1519 = shalt.err (!%p1516_p10)
}
 0x367   : > { %s1520_s22 = scalar_lea.hbm %s1896_s10, 2048  ;;  %s1524_s30 = scalar_lea.hbm %s1952_s3, 4096 }
 0x368   : > { %p1521_p11 = scmp.ne.s32.totalorder %s1896_s10, %s1520_s22  ;;  %p1525_p0 = scmp.lt.u32.totalorder %s1896_s10, %s1952_s3 }
 0x369   : > { %p1526_p1 = scmp.lt.u32.totalorder %s1524_s30, %s1520_s22  ;;  %p1528_p3 = scmp.lt.u32.totalorder %s1520_s22, %s1896_s10 }
 0x36a   : > { %p1522_p12 = pnand %p1521_p11, %p1661_p4 }
 0x36b   : > { %p1527_p2 = por %p1526_p1, %p1525_p0 }
 0x36c   : > { %p1523_p13 = pneg %p1522_p12 }
 0x36d   : > { %p1529_p5 = por %p1528_p3, %p1527_p2 }
 0x36f   : > { %p1530_p6 = pnand %p1529_p5, %p1523_p13 }
 0x371   : > { %1533 = shalt.err (!%p1530_p6)
}
 0x372   : > { %s1594_s26 = smov 128   ;;  %s1595_s6 = smov 8  }
 0x373   : > { %1326 = dma.vmem_to_hbm [thread:$0]  (%p1661_p4), %s1898_s5, 2048, %s1896_s10, %s925_s18, %s1594_s26, %s1594_s26, %s1595_s6  }
 0x374 PF: > { %p1337_p7 = scmp.ge.s32.totalorder %s1588_s20, 2  ;;  %s978_s9 = sand.u32 1, %s1568_s15  }
 0x375   : > { %s979_s11 = scalar_lea.sflag [#allocation3], %s978_s9 }
 0x376   : > { %p1331_p9 = pnand %p1337_p7, %p1668_p8 }
 0x378   : > { %1559 = dma.done.wait (!%p1331_p9), %s979_s11, 2048  }
 0x379   : > { %1561 = vsyncadd (!%p1331_p9), %s979_s11, 4294965248  ;;  %s988_s12 = scalar_lea.sflag [#allocation5], %s978_s9 }
 0x37a   : > { %1563 = dma.done.wait (!%p1331_p9), %s988_s12, 1024  }
 0x37b   : > { %1565 = vsyncadd (!%p1331_p9), %s988_s12, 4294966272  ;;  %s21_s20 = sadd.s32 1, %s1588_s20   ;;  %s1956_s15 = smov %s1572_s16 }
 0x37c   : > { %p18_p10 = scmp.ge.s32.totalorder %s21_s20, 4   ;;  %s1957_s16 = smov %s1576_s17 }
 0x37d   : > { %s1958_s17 = smov %s1674_s28  ;;  %s1959_s18 = smov %s1584_s19 }
 0x37e   : > { %s1960_s19 = smov %s1962_s23  ;;  %20 = sbr.rel (!%p18_p10) target bundleno = 6 (0x6), region = 90 }
 0x385   :  { %993 = vsyncpa [#allocation3], 1 }
 0x386   :  { %995 = vsyncpa [#allocation3 + $0x1], 1 }
 0x387   :  { %996 = vsyncpa [#allocation5], 1 }
 0x388   :  { %998 = vsyncpa [#allocation5 + $0x1], 1 }

</bundles_post_ra>
